<compile_context>
chip_gen: v6e
topology: v6e:2x2x1
jax: 0.10.0
libtpu: 0.0.40
codegen_flags: <defaults>
</compile_context>

<pallas_src>
import functools

import jax
import jax.numpy as jnp
import numpy as np
from jax.experimental import pallas as pl
from jax.experimental.pallas import tpu as pltpu

LANE = 128      # lane width: channel dims padded to a multiple of this
SUBLANE = 8     # sublane width: time dim padded to a multiple of this


def _round_up(n, m):
    return ((n + m - 1) // m) * m


def _pad_to(x, shape):
    pads = [(0, s - d) for s, d in zip(shape, x.shape)]
    return jnp.pad(x, pads)


# --------------------------------------------------------------------------
# Kernel
# --------------------------------------------------------------------------
def _shift_rows(v, shift, masks):
    """Row t of result = v[t - shift]; zeros for t < shift (static shift)."""
    if shift == 0:
        return v
    L = v.shape[0]
    if shift >= L:
        return jnp.zeros_like(v)
    rolled = jnp.roll(v, shift, axis=0)           # XLU sublane rotate
    return jnp.where(masks[shift], 0.0, rolled)   # VPU select with hoisted mask


def _causal_conv(v, wf_ref, b_ref, k, dilation, masks):
    """Causal dilated conv + chomp + ReLU as a single fused-tap matmul.

    v      : (Lp, Cin_p)
    wf_ref : (k*Cin_p, Cout_p)   rows [j*Cin_p:(j+1)*Cin_p] = tap j
    b_ref  : (1, Cout_p)
    """
    if k == 1:
        xcat = v
    else:
        parts = [_shift_rows(v, (k - 1 - j) * dilation, masks) for j in range(k)]
        xcat = jnp.concatenate(parts, axis=1)     # (Lp, k*Cin_p), lane concat
    y = jnp.dot(xcat, wf_ref[...], preferred_element_type=jnp.float32) + b_ref[...]
    return jnp.maximum(y, 0.0)                    # ReLU; dropout = identity (inference)


def fused_tcn_kernel(x_ref, *refs, layer_meta, kernel_size):
    """All TemporalBlocks for one batch element, activations kept on-chip.

    x_ref : (1, Lp, Cin_p)
    refs  : per-layer params [w1, b1, w2, b2, (wd, bd)?] ... , then o_ref last.
    """
    o_ref = refs[-1]
    p = refs[:-1]
    Lp = x_ref.shape[1]

    # Hoist: build each distinct shift mask exactly once per kernel trace.
    masks = {}
    row = jax.lax.broadcasted_iota(jnp.int32, (Lp, 1), 0)
    for dilation, _ in layer_meta:
        for j in range(kernel_size):
            s = (kernel_size - 1 - j) * dilation
            if 0 < s < Lp and s not in masks:
                masks[s] = row < s

    x = x_ref[0]                                  # (Lp, Cin_p), f32
    idx = 0
    for dilation, has_down in layer_meta:
        w1, b1, w2, b2 = p[idx], p[idx + 1], p[idx + 2], p[idx + 3]
        idx += 4
        h1 = _causal_conv(x, w1, b1, kernel_size, dilation, masks)
        h2 = _causal_conv(h1, w2, b2, kernel_size, dilation, masks)
        if has_down:                              # 1x1 downsample conv on residual
            wd, bd = p[idx], p[idx + 1]
            idx += 2
            res = jnp.dot(x, wd[...], preferred_element_type=jnp.float32) + bd[...]
        else:                                     # identity residual: no matmul
            res = x
        x = jnp.maximum(h2 + res, 0.0)            # residual add + ReLU fused (VPU)
    o_ref[0] = x.astype(o_ref.dtype)


# --------------------------------------------------------------------------
# Parameter packing (pad channels to lane multiples, fuse taps into one matrix)
# --------------------------------------------------------------------------
def pack_params(params, num_inputs, kernel_size):
    """PyTorch-layout params -> padded, tap-fused kernel operands."""
    flat, down_flags = [], []
    cin_p = _round_up(num_inputs, LANE)
    for prm in params:
        out_ch = prm["w1"].shape[0]
        cout_p = _round_up(out_ch, LANE)
        # (Cout, Cin, k) -> (k, Cin, Cout) -> zero-pad -> (k*Cin_p, Cout_p)
        w1 = jnp.transpose(prm["w1"], (2, 1, 0))
        w1 = _pad_to(w1, (kernel_size, cin_p, cout_p)).reshape(kernel_size * cin_p, cout_p)
        w2 = jnp.transpose(prm["w2"], (2, 1, 0))
        w2 = _pad_to(w2, (kernel_size, cout_p, cout_p)).reshape(kernel_size * cout_p, cout_p)
        b1 = _pad_to(prm["b1"][None, :], (1, cout_p))
        b2 = _pad_to(prm["b2"][None, :], (1, cout_p))
        flat += [w1, b1, w2, b2]
        has_down = "wd" in prm
        if has_down:
            wd = _pad_to(jnp.transpose(prm["wd"][:, :, 0], (1, 0)), (cin_p, cout_p))
            bd = _pad_to(prm["bd"][None, :], (1, cout_p))
            flat += [wd, bd]
        down_flags.append(has_down)
        cin_p = cout_p
    return flat, down_flags


# --------------------------------------------------------------------------
# Wrapper
# --------------------------------------------------------------------------
def temporal_conv_net(x_ncl, params, dilations, kernel_size):
    """x_ncl: (N, C, L) like PyTorch; returns (N, C_last, L)."""
    N, C, L = x_ncl.shape
    cin_p = _round_up(C, LANE)
    Lp = _round_up(L, SUBLANE)
    cout_last = params[-1]["w1"].shape[0]
    cout_last_p = _round_up(cout_last, LANE)

    # NCL -> NLC internal layout, zero-pad time and channels.
    x = jnp.transpose(x_ncl, (0, 2, 1))
    x = jnp.pad(x, ((0, 0), (0, Lp - L), (0, cin_p - C))).astype(jnp.float32)

    flat, down_flags = pack_params(params, C, kernel_size)
    layer_meta = tuple((int(d), bool(h)) for d, h in zip(dilations, down_flags))

    in_specs = [pl.BlockSpec((1, Lp, cin_p), lambda b: (b, 0, 0))]
    for arr in flat:
        r, c = arr.shape
        in_specs.append(pl.BlockSpec((r, c), lambda b: (0, 0)))

    kernel = functools.partial(fused_tcn_kernel,
                               layer_meta=layer_meta, kernel_size=kernel_size)
    out = pl.pallas_call(
        kernel,
        out_shape=jax.ShapeDtypeStruct((N, Lp, cout_last_p), jnp.float32),
        grid=(N,),
        in_specs=in_specs,
        out_specs=pl.BlockSpec((1, Lp, cout_last_p), lambda b: (b, 0, 0)),
        compiler_params=pltpu.CompilerParams(dimension_semantics=("parallel",)),
    )(x, *flat)

    out = out[:, :L, :cout_last]                  # drop padding
    return jnp.transpose(out, (0, 2, 1))          # back to NCL


# --------------------------------------------------------------------------
# Parameter init (deterministic "effective" post-weight_norm weights, PyTorch layout)
# --------------------------------------------------------------------------
def init_params(key, num_inputs, num_channels, kernel_size=2):
    params, dilations = [], []
    in_ch = num_inputs
    for i, out_ch in enumerate(num_channels):
        d = 2 ** i
        ks = jax.random.split(jax.random.fold_in(key, i), 6)
        p = dict(
            w1=0.01 * jax.random.normal(ks[0], (out_ch, in_ch, kernel_size), jnp.float32),
            b1=0.01 * jax.random.normal(ks[2], (out_ch,), jnp.float32),
            w2=0.01 * jax.random.normal(ks[1], (out_ch, out_ch, kernel_size), jnp.float32),
            b2=0.01 * jax.random.normal(ks[3], (out_ch,), jnp.float32),
        )
        if in_ch != out_ch:                       # downsample conv exists
            p["wd"] = 0.01 * jax.random.normal(ks[4], (out_ch, in_ch, 1), jnp.float32)
            p["bd"] = 0.01 * jax.random.normal(ks[5], (out_ch,), jnp.float32)
        params.append(p)
        dilations.append(d)
        in_ch = out_ch
    return params, dilations


# --------------------------------------------------------------------------
# Pure-JAX reference (mirrors PyTorch TemporalConvNet forward, inference)
# --------------------------------------------------------------------------
def _ref_net(x_ncl, params, dilations, kernel_size):
    x = jnp.transpose(x_ncl, (0, 2, 1))           # (N, L, C)
    N, L, _ = x.shape
    for p, d in zip(params, dilations):
        def conv(v, w, b, d=d):
            cout, _, k = w.shape
            out = jnp.zeros((N, L, cout), jnp.float32) + b[None, None, :]
            for j in range(k):
                sh = (k - 1 - j) * d
                shifted = jnp.pad(v, ((0, 0), (sh, 0), (0, 0)))[:, :L, :]
                out = out + jnp.einsum("nlc,oc->nlo", shifted, w[:, :, j])
            return out
        h1 = jnp.maximum(conv(x, p["w1"], p["b1"]), 0.0)
        h2 = jnp.maximum(conv(h1, p["w2"], p["b2"]), 0.0)
        if "wd" in p:
            res = jnp.einsum("nlc,oc->nlo", x, p["wd"][:, :, 0]) + p["bd"][None, None, :]
        else:
            res = x
        x = jnp.maximum(h2 + res, 0.0)
    return jnp.transpose(x, (0, 2, 1))


if __name__ == "__main__":
    key = jax.random.PRNGKey(0)
    N, num_inputs, L = 2, 4, 16
    num_channels = [8, 8, 16]
    kernel_size = 2

    kp, kx = jax.random.split(key)
    params, dilations = init_params(kp, num_inputs, num_channels, kernel_size)
    x = jax.random.normal(kx, (N, num_inputs, L), jnp.float32)   # NCL like PyTorch

    out = temporal_conv_net(x, params, dilations, kernel_size)
    out = jax.block_until_ready(out)

    ref = _ref_net(x, params, dilations, kernel_size)
    assert out.shape == (N, num_channels[-1], L), out.shape
    np.testing.assert_allclose(np.asarray(out), np.asarray(ref), rtol=1e-5, atol=1e-5)

    print("KERNEL_OK")
</pallas_src>

<mosaic_0001>
module attributes {stable_mosaic.version = 11 : i64} {
  func.func @fused_tcn_kernel(%arg0: i32, %arg1: memref<1x16x128xf32, #tpu.memory_space<vmem>>, %arg2: memref<256x128xf32, #tpu.memory_space<vmem>>, %arg3: memref<1x128xf32, #tpu.memory_space<vmem>>, %arg4: memref<256x128xf32, #tpu.memory_space<vmem>>, %arg5: memref<1x128xf32, #tpu.memory_space<vmem>>, %arg6: memref<128x128xf32, #tpu.memory_space<vmem>>, %arg7: memref<1x128xf32, #tpu.memory_space<vmem>>, %arg8: memref<256x128xf32, #tpu.memory_space<vmem>>, %arg9: memref<1x128xf32, #tpu.memory_space<vmem>>, %arg10: memref<256x128xf32, #tpu.memory_space<vmem>>, %arg11: memref<1x128xf32, #tpu.memory_space<vmem>>, %arg12: memref<256x128xf32, #tpu.memory_space<vmem>>, %arg13: memref<1x128xf32, #tpu.memory_space<vmem>>, %arg14: memref<256x128xf32, #tpu.memory_space<vmem>>, %arg15: memref<1x128xf32, #tpu.memory_space<vmem>>, %arg16: memref<128x128xf32, #tpu.memory_space<vmem>>, %arg17: memref<1x128xf32, #tpu.memory_space<vmem>>, %arg18: memref<1x16x128xf32, #tpu.memory_space<vmem>>) attributes {dimension_semantics = [#tpu.dimension_semantics<parallel>], iteration_bounds = array<i64: 2>, scalar_prefetch = 0 : i64, scratch_operands = 0 : i64, tpu.core_type = #tpu.core_type<tc>, window_params = [{transform_indices = @transform_0, window_bounds = array<i64: 1, 16, 128>}, {pipeline_mode = #tpu.pipeline_mode<synchronous>, transform_indices = @transform_1, window_bounds = array<i64: 256, 128>}, {pipeline_mode = #tpu.pipeline_mode<synchronous>, transform_indices = @transform_2, window_bounds = array<i64: 1, 128>}, {pipeline_mode = #tpu.pipeline_mode<synchronous>, transform_indices = @transform_3, window_bounds = array<i64: 256, 128>}, {pipeline_mode = #tpu.pipeline_mode<synchronous>, transform_indices = @transform_4, window_bounds = array<i64: 1, 128>}, {pipeline_mode = #tpu.pipeline_mode<synchronous>, transform_indices = @transform_5, window_bounds = array<i64: 128, 128>}, {pipeline_mode = #tpu.pipeline_mode<synchronous>, transform_indices = @transform_6, window_bounds = array<i64: 1, 128>}, {pipeline_mode = #tpu.pipeline_mode<synchronous>, transform_indices = @transform_7, window_bounds = array<i64: 256, 128>}, {pipeline_mode = #tpu.pipeline_mode<synchronous>, transform_indices = @transform_8, window_bounds = array<i64: 1, 128>}, {pipeline_mode = #tpu.pipeline_mode<synchronous>, transform_indices = @transform_9, window_bounds = array<i64: 256, 128>}, {pipeline_mode = #tpu.pipeline_mode<synchronous>, transform_indices = @transform_10, window_bounds = array<i64: 1, 128>}, {pipeline_mode = #tpu.pipeline_mode<synchronous>, transform_indices = @transform_11, window_bounds = array<i64: 256, 128>}, {pipeline_mode = #tpu.pipeline_mode<synchronous>, transform_indices = @transform_12, window_bounds = array<i64: 1, 128>}, {pipeline_mode = #tpu.pipeline_mode<synchronous>, transform_indices = @transform_13, window_bounds = array<i64: 256, 128>}, {pipeline_mode = #tpu.pipeline_mode<synchronous>, transform_indices = @transform_14, window_bounds = array<i64: 1, 128>}, {pipeline_mode = #tpu.pipeline_mode<synchronous>, transform_indices = @transform_15, window_bounds = array<i64: 128, 128>}, {pipeline_mode = #tpu.pipeline_mode<synchronous>, transform_indices = @transform_16, window_bounds = array<i64: 1, 128>}, {transform_indices = @transform_17, window_bounds = array<i64: 1, 16, 128>}]} {
    %0 = tpu.iota {dimensions = array<i32: 0>} : vector<16x1xi32>
    %c1_i32 = arith.constant 1 : i32
    %1 = vector.broadcast %c1_i32 : i32 to vector<16x1xi32>
    %2 = arith.cmpi slt, %0, %1 : vector<16x1xi32>
    %c2_i32 = arith.constant 2 : i32
    %3 = vector.broadcast %c2_i32 : i32 to vector<16x1xi32>
    %4 = arith.cmpi slt, %0, %3 : vector<16x1xi32>
    %c4_i32 = arith.constant 4 : i32
    %5 = vector.broadcast %c4_i32 : i32 to vector<16x1xi32>
    %6 = arith.cmpi slt, %0, %5 : vector<16x1xi32>
    %c0 = arith.constant 0 : index
    %c0_0 = arith.constant 0 : index
    %c0_1 = arith.constant 0 : index
    %7 = vector.load %arg1[%c0, %c0_0, %c0_1] : memref<1x16x128xf32, #tpu.memory_space<vmem>>, vector<1x16x128xf32>
    %8 = vector.shape_cast %7 : vector<1x16x128xf32> to vector<16x128xf32>
    %9 = vector.extract_strided_slice %8 {offsets = [15, 0], sizes = [1, 128], strides = [1, 1]} : vector<16x128xf32> to vector<1x128xf32>
    %10 = vector.extract_strided_slice %8 {offsets = [0, 0], sizes = [15, 128], strides = [1, 1]} : vector<16x128xf32> to vector<15x128xf32>
    %11 = tpu.concatenate %9, %10 in 0 : vector<1x128xf32>, vector<15x128xf32> -> vector<16x128xf32>
    %cst = arith.constant 0.000000e+00 : f32
    %12 = vector.shape_cast %2 : vector<16x1xi1> to vector<16x1xi1>
    %13 = vector.broadcast %12 : vector<16x1xi1> to vector<16x128xi1>
    %14 = vector.broadcast %cst : f32 to vector<16x128xf32>
    %15 = arith.select %13, %14, %11 : vector<16x128xi1>, vector<16x128xf32>
    %16 = tpu.concatenate %15, %8 in 1 : vector<16x128xf32>, vector<16x128xf32> -> vector<16x256xf32>
    %c0_2 = arith.constant 0 : index
    %c0_3 = arith.constant 0 : index
    %17 = vector.load %arg2[%c0_2, %c0_3] : memref<256x128xf32, #tpu.memory_space<vmem>>, vector<256x128xf32>
    %cst_4 = arith.constant dense<0.000000e+00> : vector<16x128xf32>
    %18 = tpu.matmul %16, %17, %cst_4 {dimension_numbers = #tpu.dot_dimension_numbers<[1], [0], [0], [1], [0, 0, 1, 1], [], []>} : vector<16x256xf32>, vector<256x128xf32>, vector<16x128xf32> -> vector<16x128xf32>
    %c0_5 = arith.constant 0 : index
    %c0_6 = arith.constant 0 : index
    %19 = vector.load %arg3[%c0_5, %c0_6] : memref<1x128xf32, #tpu.memory_space<vmem>>, vector<1x128xf32>
    %20 = vector.broadcast %19 : vector<1x128xf32> to vector<16x128xf32>
    %21 = arith.addf %18, %20 : vector<16x128xf32>
    %cst_7 = arith.constant 0.000000e+00 : f32
    %22 = vector.broadcast %cst_7 : f32 to vector<16x128xf32>
    %23 = arith.maximumf %21, %22 : vector<16x128xf32>
    %24 = vector.extract_strided_slice %23 {offsets = [15, 0], sizes = [1, 128], strides = [1, 1]} : vector<16x128xf32> to vector<1x128xf32>
    %25 = vector.extract_strided_slice %23 {offsets = [0, 0], sizes = [15, 128], strides = [1, 1]} : vector<16x128xf32> to vector<15x128xf32>
    %26 = tpu.concatenate %24, %25 in 0 : vector<1x128xf32>, vector<15x128xf32> -> vector<16x128xf32>
    %cst_8 = arith.constant 0.000000e+00 : f32
    %27 = vector.shape_cast %2 : vector<16x1xi1> to vector<16x1xi1>
    %28 = vector.broadcast %27 : vector<16x1xi1> to vector<16x128xi1>
    %29 = vector.broadcast %cst_8 : f32 to vector<16x128xf32>
    %30 = arith.select %28, %29, %26 : vector<16x128xi1>, vector<16x128xf32>
    %31 = tpu.concatenate %30, %23 in 1 : vector<16x128xf32>, vector<16x128xf32> -> vector<16x256xf32>
    %c0_9 = arith.constant 0 : index
    %c0_10 = arith.constant 0 : index
    %32 = vector.load %arg4[%c0_9, %c0_10] : memref<256x128xf32, #tpu.memory_space<vmem>>, vector<256x128xf32>
    %cst_11 = arith.constant dense<0.000000e+00> : vector<16x128xf32>
    %33 = tpu.matmul %31, %32, %cst_11 {dimension_numbers = #tpu.dot_dimension_numbers<[1], [0], [0], [1], [0, 0, 1, 1], [], []>} : vector<16x256xf32>, vector<256x128xf32>, vector<16x128xf32> -> vector<16x128xf32>
    %c0_12 = arith.constant 0 : index
    %c0_13 = arith.constant 0 : index
    %34 = vector.load %arg5[%c0_12, %c0_13] : memref<1x128xf32, #tpu.memory_space<vmem>>, vector<1x128xf32>
    %35 = vector.broadcast %34 : vector<1x128xf32> to vector<16x128xf32>
    %36 = arith.addf %33, %35 : vector<16x128xf32>
    %cst_14 = arith.constant 0.000000e+00 : f32
    %37 = vector.broadcast %cst_14 : f32 to vector<16x128xf32>
    %38 = arith.maximumf %36, %37 : vector<16x128xf32>
    %c0_15 = arith.constant 0 : index
    %c0_16 = arith.constant 0 : index
    %39 = vector.load %arg6[%c0_15, %c0_16] : memref<128x128xf32, #tpu.memory_space<vmem>>, vector<128x128xf32>
    %cst_17 = arith.constant dense<0.000000e+00> : vector<16x128xf32>
    %40 = tpu.matmul %8, %39, %cst_17 {dimension_numbers = #tpu.dot_dimension_numbers<[1], [0], [0], [1], [0, 0, 1, 1], [], []>} : vector<16x128xf32>, vector<128x128xf32>, vector<16x128xf32> -> vector<16x128xf32>
    %c0_18 = arith.constant 0 : index
    %c0_19 = arith.constant 0 : index
    %41 = vector.load %arg7[%c0_18, %c0_19] : memref<1x128xf32, #tpu.memory_space<vmem>>, vector<1x128xf32>
    %42 = vector.broadcast %41 : vector<1x128xf32> to vector<16x128xf32>
    %43 = arith.addf %40, %42 : vector<16x128xf32>
    %44 = arith.addf %38, %43 : vector<16x128xf32>
    %cst_20 = arith.constant 0.000000e+00 : f32
    %45 = vector.broadcast %cst_20 : f32 to vector<16x128xf32>
    %46 = arith.maximumf %44, %45 : vector<16x128xf32>
    %47 = vector.extract_strided_slice %46 {offsets = [14, 0], sizes = [2, 128], strides = [1, 1]} : vector<16x128xf32> to vector<2x128xf32>
    %48 = vector.extract_strided_slice %46 {offsets = [0, 0], sizes = [14, 128], strides = [1, 1]} : vector<16x128xf32> to vector<14x128xf32>
    %49 = tpu.concatenate %47, %48 in 0 : vector<2x128xf32>, vector<14x128xf32> -> vector<16x128xf32>
    %cst_21 = arith.constant 0.000000e+00 : f32
    %50 = vector.shape_cast %4 : vector<16x1xi1> to vector<16x1xi1>
    %51 = vector.broadcast %50 : vector<16x1xi1> to vector<16x128xi1>
    %52 = vector.broadcast %cst_21 : f32 to vector<16x128xf32>
    %53 = arith.select %51, %52, %49 : vector<16x128xi1>, vector<16x128xf32>
    %54 = tpu.concatenate %53, %46 in 1 : vector<16x128xf32>, vector<16x128xf32> -> vector<16x256xf32>
    %c0_22 = arith.constant 0 : index
    %c0_23 = arith.constant 0 : index
    %55 = vector.load %arg8[%c0_22, %c0_23] : memref<256x128xf32, #tpu.memory_space<vmem>>, vector<256x128xf32>
    %cst_24 = arith.constant dense<0.000000e+00> : vector<16x128xf32>
    %56 = tpu.matmul %54, %55, %cst_24 {dimension_numbers = #tpu.dot_dimension_numbers<[1], [0], [0], [1], [0, 0, 1, 1], [], []>} : vector<16x256xf32>, vector<256x128xf32>, vector<16x128xf32> -> vector<16x128xf32>
    %c0_25 = arith.constant 0 : index
    %c0_26 = arith.constant 0 : index
    %57 = vector.load %arg9[%c0_25, %c0_26] : memref<1x128xf32, #tpu.memory_space<vmem>>, vector<1x128xf32>
    %58 = vector.broadcast %57 : vector<1x128xf32> to vector<16x128xf32>
    %59 = arith.addf %56, %58 : vector<16x128xf32>
    %cst_27 = arith.constant 0.000000e+00 : f32
    %60 = vector.broadcast %cst_27 : f32 to vector<16x128xf32>
    %61 = arith.maximumf %59, %60 : vector<16x128xf32>
    %62 = vector.extract_strided_slice %61 {offsets = [14, 0], sizes = [2, 128], strides = [1, 1]} : vector<16x128xf32> to vector<2x128xf32>
    %63 = vector.extract_strided_slice %61 {offsets = [0, 0], sizes = [14, 128], strides = [1, 1]} : vector<16x128xf32> to vector<14x128xf32>
    %64 = tpu.concatenate %62, %63 in 0 : vector<2x128xf32>, vector<14x128xf32> -> vector<16x128xf32>
    %cst_28 = arith.constant 0.000000e+00 : f32
    %65 = vector.shape_cast %4 : vector<16x1xi1> to vector<16x1xi1>
    %66 = vector.broadcast %65 : vector<16x1xi1> to vector<16x128xi1>
    %67 = vector.broadcast %cst_28 : f32 to vector<16x128xf32>
    %68 = arith.select %66, %67, %64 : vector<16x128xi1>, vector<16x128xf32>
    %69 = tpu.concatenate %68, %61 in 1 : vector<16x128xf32>, vector<16x128xf32> -> vector<16x256xf32>
    %c0_29 = arith.constant 0 : index
    %c0_30 = arith.constant 0 : index
    %70 = vector.load %arg10[%c0_29, %c0_30] : memref<256x128xf32, #tpu.memory_space<vmem>>, vector<256x128xf32>
    %cst_31 = arith.constant dense<0.000000e+00> : vector<16x128xf32>
    %71 = tpu.matmul %69, %70, %cst_31 {dimension_numbers = #tpu.dot_dimension_numbers<[1], [0], [0], [1], [0, 0, 1, 1], [], []>} : vector<16x256xf32>, vector<256x128xf32>, vector<16x128xf32> -> vector<16x128xf32>
    %c0_32 = arith.constant 0 : index
    %c0_33 = arith.constant 0 : index
    %72 = vector.load %arg11[%c0_32, %c0_33] : memref<1x128xf32, #tpu.memory_space<vmem>>, vector<1x128xf32>
    %73 = vector.broadcast %72 : vector<1x128xf32> to vector<16x128xf32>
    %74 = arith.addf %71, %73 : vector<16x128xf32>
    %cst_34 = arith.constant 0.000000e+00 : f32
    %75 = vector.broadcast %cst_34 : f32 to vector<16x128xf32>
    %76 = arith.maximumf %74, %75 : vector<16x128xf32>
    %77 = arith.addf %76, %46 : vector<16x128xf32>
    %cst_35 = arith.constant 0.000000e+00 : f32
    %78 = vector.broadcast %cst_35 : f32 to vector<16x128xf32>
    %79 = arith.maximumf %77, %78 : vector<16x128xf32>
    %80 = vector.extract_strided_slice %79 {offsets = [12, 0], sizes = [4, 128], strides = [1, 1]} : vector<16x128xf32> to vector<4x128xf32>
    %81 = vector.extract_strided_slice %79 {offsets = [0, 0], sizes = [12, 128], strides = [1, 1]} : vector<16x128xf32> to vector<12x128xf32>
    %82 = tpu.concatenate %80, %81 in 0 : vector<4x128xf32>, vector<12x128xf32> -> vector<16x128xf32>
    %cst_36 = arith.constant 0.000000e+00 : f32
    %83 = vector.shape_cast %6 : vector<16x1xi1> to vector<16x1xi1>
    %84 = vector.broadcast %83 : vector<16x1xi1> to vector<16x128xi1>
    %85 = vector.broadcast %cst_36 : f32 to vector<16x128xf32>
    %86 = arith.select %84, %85, %82 : vector<16x128xi1>, vector<16x128xf32>
    %87 = tpu.concatenate %86, %79 in 1 : vector<16x128xf32>, vector<16x128xf32> -> vector<16x256xf32>
    %c0_37 = arith.constant 0 : index
    %c0_38 = arith.constant 0 : index
    %88 = vector.load %arg12[%c0_37, %c0_38] : memref<256x128xf32, #tpu.memory_space<vmem>>, vector<256x128xf32>
    %cst_39 = arith.constant dense<0.000000e+00> : vector<16x128xf32>
    %89 = tpu.matmul %87, %88, %cst_39 {dimension_numbers = #tpu.dot_dimension_numbers<[1], [0], [0], [1], [0, 0, 1, 1], [], []>} : vector<16x256xf32>, vector<256x128xf32>, vector<16x128xf32> -> vector<16x128xf32>
    %c0_40 = arith.constant 0 : index
    %c0_41 = arith.constant 0 : index
    %90 = vector.load %arg13[%c0_40, %c0_41] : memref<1x128xf32, #tpu.memory_space<vmem>>, vector<1x128xf32>
    %91 = vector.broadcast %90 : vector<1x128xf32> to vector<16x128xf32>
    %92 = arith.addf %89, %91 : vector<16x128xf32>
    %cst_42 = arith.constant 0.000000e+00 : f32
    %93 = vector.broadcast %cst_42 : f32 to vector<16x128xf32>
    %94 = arith.maximumf %92, %93 : vector<16x128xf32>
    %95 = vector.extract_strided_slice %94 {offsets = [12, 0], sizes = [4, 128], strides = [1, 1]} : vector<16x128xf32> to vector<4x128xf32>
    %96 = vector.extract_strided_slice %94 {offsets = [0, 0], sizes = [12, 128], strides = [1, 1]} : vector<16x128xf32> to vector<12x128xf32>
    %97 = tpu.concatenate %95, %96 in 0 : vector<4x128xf32>, vector<12x128xf32> -> vector<16x128xf32>
    %cst_43 = arith.constant 0.000000e+00 : f32
    %98 = vector.shape_cast %6 : vector<16x1xi1> to vector<16x1xi1>
    %99 = vector.broadcast %98 : vector<16x1xi1> to vector<16x128xi1>
    %100 = vector.broadcast %cst_43 : f32 to vector<16x128xf32>
    %101 = arith.select %99, %100, %97 : vector<16x128xi1>, vector<16x128xf32>
    %102 = tpu.concatenate %101, %94 in 1 : vector<16x128xf32>, vector<16x128xf32> -> vector<16x256xf32>
    %c0_44 = arith.constant 0 : index
    %c0_45 = arith.constant 0 : index
    %103 = vector.load %arg14[%c0_44, %c0_45] : memref<256x128xf32, #tpu.memory_space<vmem>>, vector<256x128xf32>
    %cst_46 = arith.constant dense<0.000000e+00> : vector<16x128xf32>
    %104 = tpu.matmul %102, %103, %cst_46 {dimension_numbers = #tpu.dot_dimension_numbers<[1], [0], [0], [1], [0, 0, 1, 1], [], []>} : vector<16x256xf32>, vector<256x128xf32>, vector<16x128xf32> -> vector<16x128xf32>
    %c0_47 = arith.constant 0 : index
    %c0_48 = arith.constant 0 : index
    %105 = vector.load %arg15[%c0_47, %c0_48] : memref<1x128xf32, #tpu.memory_space<vmem>>, vector<1x128xf32>
    %106 = vector.broadcast %105 : vector<1x128xf32> to vector<16x128xf32>
    %107 = arith.addf %104, %106 : vector<16x128xf32>
    %cst_49 = arith.constant 0.000000e+00 : f32
    %108 = vector.broadcast %cst_49 : f32 to vector<16x128xf32>
    %109 = arith.maximumf %107, %108 : vector<16x128xf32>
    %c0_50 = arith.constant 0 : index
    %c0_51 = arith.constant 0 : index
    %110 = vector.load %arg16[%c0_50, %c0_51] : memref<128x128xf32, #tpu.memory_space<vmem>>, vector<128x128xf32>
    %cst_52 = arith.constant dense<0.000000e+00> : vector<16x128xf32>
    %111 = tpu.matmul %79, %110, %cst_52 {dimension_numbers = #tpu.dot_dimension_numbers<[1], [0], [0], [1], [0, 0, 1, 1], [], []>} : vector<16x128xf32>, vector<128x128xf32>, vector<16x128xf32> -> vector<16x128xf32>
    %c0_53 = arith.constant 0 : index
    %c0_54 = arith.constant 0 : index
    %112 = vector.load %arg17[%c0_53, %c0_54] : memref<1x128xf32, #tpu.memory_space<vmem>>, vector<1x128xf32>
    %113 = vector.broadcast %112 : vector<1x128xf32> to vector<16x128xf32>
    %114 = arith.addf %111, %113 : vector<16x128xf32>
    %115 = arith.addf %109, %114 : vector<16x128xf32>
    %cst_55 = arith.constant 0.000000e+00 : f32
    %116 = vector.broadcast %cst_55 : f32 to vector<16x128xf32>
    %117 = arith.maximumf %115, %116 : vector<16x128xf32>
    %c0_56 = arith.constant 0 : index
    %c0_57 = arith.constant 0 : index
    %c0_58 = arith.constant 0 : index
    %118 = vector.load %arg18[%c0_56, %c0_57, %c0_58] : memref<1x16x128xf32, #tpu.memory_space<vmem>>, vector<1x16x128xf32>
    %119 = vector.shape_cast %118 : vector<1x16x128xf32> to vector<16x128xf32>
    %120 = vector.shape_cast %117 : vector<16x128xf32> to vector<1x16x128xf32>
    tpu.vector_store %arg18[%c0_56, %c0_57, %c0_58], %120 {strides = array<i32>} : memref<1x16x128xf32, #tpu.memory_space<vmem>>, vector<1x16x128xf32>,
    return
  }
  func.func @transform_0(%arg0: i32) -> (i32, i32, i32) {
    %c0_i32 = arith.constant 0 : i32
    %c0_i32_0 = arith.constant 0 : i32
    %c0_i32_1 = arith.constant 0 : i32
    return %arg0, %c0_i32, %c0_i32_0 : i32, i32, i32
  }
  func.func @transform_1(%arg0: i32) -> (i32, i32) {
    %c0_i32 = arith.constant 0 : i32
    %c0_i32_0 = arith.constant 0 : i32
    %c0_i32_1 = arith.constant 0 : i32
    return %c0_i32, %c0_i32_0 : i32, i32
  }
  func.func @transform_2(%arg0: i32) -> (i32, i32) {
    %c0_i32 = arith.constant 0 : i32
    %c0_i32_0 = arith.constant 0 : i32
    %c0_i32_1 = arith.constant 0 : i32
    return %c0_i32, %c0_i32_0 : i32, i32
  }
  func.func @transform_3(%arg0: i32) -> (i32, i32) {
    %c0_i32 = arith.constant 0 : i32
    %c0_i32_0 = arith.constant 0 : i32
    %c0_i32_1 = arith.constant 0 : i32
    return %c0_i32, %c0_i32_0 : i32, i32
  }
  func.func @transform_4(%arg0: i32) -> (i32, i32) {
    %c0_i32 = arith.constant 0 : i32
    %c0_i32_0 = arith.constant 0 : i32
    %c0_i32_1 = arith.constant 0 : i32
    return %c0_i32, %c0_i32_0 : i32, i32
  }
  func.func @transform_5(%arg0: i32) -> (i32, i32) {
    %c0_i32 = arith.constant 0 : i32
    %c0_i32_0 = arith.constant 0 : i32
    %c0_i32_1 = arith.constant 0 : i32
    return %c0_i32, %c0_i32_0 : i32, i32
  }
  func.func @transform_6(%arg0: i32) -> (i32, i32) {
    %c0_i32 = arith.constant 0 : i32
    %c0_i32_0 = arith.constant 0 : i32
    %c0_i32_1 = arith.constant 0 : i32
    return %c0_i32, %c0_i32_0 : i32, i32
  }
  func.func @transform_7(%arg0: i32) -> (i32, i32) {
    %c0_i32 = arith.constant 0 : i32
    %c0_i32_0 = arith.constant 0 : i32
    %c0_i32_1 = arith.constant 0 : i32
    return %c0_i32, %c0_i32_0 : i32, i32
  }
  func.func @transform_8(%arg0: i32) -> (i32, i32) {
    %c0_i32 = arith.constant 0 : i32
    %c0_i32_0 = arith.constant 0 : i32
    %c0_i32_1 = arith.constant 0 : i32
    return %c0_i32, %c0_i32_0 : i32, i32
  }
  func.func @transform_9(%arg0: i32) -> (i32, i32) {
    %c0_i32 = arith.constant 0 : i32
    %c0_i32_0 = arith.constant 0 : i32
    %c0_i32_1 = arith.constant 0 : i32
    return %c0_i32, %c0_i32_0 : i32, i32
  }
  func.func @transform_10(%arg0: i32) -> (i32, i32) {
    %c0_i32 = arith.constant 0 : i32
    %c0_i32_0 = arith.constant 0 : i32
    %c0_i32_1 = arith.constant 0 : i32
    return %c0_i32, %c0_i32_0 : i32, i32
  }
  func.func @transform_11(%arg0: i32) -> (i32, i32) {
    %c0_i32 = arith.constant 0 : i32
    %c0_i32_0 = arith.constant 0 : i32
    %c0_i32_1 = arith.constant 0 : i32
    return %c0_i32, %c0_i32_0 : i32, i32
  }
  func.func @transform_12(%arg0: i32) -> (i32, i32) {
    %c0_i32 = arith.constant 0 : i32
    %c0_i32_0 = arith.constant 0 : i32
    %c0_i32_1 = arith.constant 0 : i32
    return %c0_i32, %c0_i32_0 : i32, i32
  }
  func.func @transform_13(%arg0: i32) -> (i32, i32) {
    %c0_i32 = arith.constant 0 : i32
    %c0_i32_0 = arith.constant 0 : i32
    %c0_i32_1 = arith.constant 0 : i32
    return %c0_i32, %c0_i32_0 : i32, i32
  }
  func.func @transform_14(%arg0: i32) -> (i32, i32) {
    %c0_i32 = arith.constant 0 : i32
    %c0_i32_0 = arith.constant 0 : i32
    %c0_i32_1 = arith.constant 0 : i32
    return %c0_i32, %c0_i32_0 : i32, i32
  }
  func.func @transform_15(%arg0: i32) -> (i32, i32) {
    %c0_i32 = arith.constant 0 : i32
    %c0_i32_0 = arith.constant 0 : i32
    %c0_i32_1 = arith.constant 0 : i32
    return %c0_i32, %c0_i32_0 : i32, i32
  }
  func.func @transform_16(%arg0: i32) -> (i32, i32) {
    %c0_i32 = arith.constant 0 : i32
    %c0_i32_0 = arith.constant 0 : i32
    %c0_i32_1 = arith.constant 0 : i32
    return %c0_i32, %c0_i32_0 : i32, i32
  }
  func.func @transform_17(%arg0: i32) -> (i32, i32, i32) {
    %c0_i32 = arith.constant 0 : i32
    %c0_i32_0 = arith.constant 0 : i32
    %c0_i32_1 = arith.constant 0 : i32
    return %arg0, %c0_i32, %c0_i32_0 : i32, i32, i32
  }
}

</mosaic_0001>

<bundles_post_ra>
// kernel: tpu_custom_call.1
= control target key start
LH: loop header
LB: loop body
LE: loop exit
PB: predicated region body
PF: predicated region fallthrough
CT: control target
= control target key end

     0   :  { %s3156_s0 = inlined_call_operand.hbm [shape: f32[2,16,128], index: 0, kind: input, shape index: {}]   ;;  %s3157_s1 = inlined_call_operand.hbm [shape: f32[256,128], index: 1, kind: input, shape index: {}]   ;;  %s3158_s2 = inlined_call_operand.vmem [shape: f32[1,128], index: 2, kind: input, shape index: {}]   ;;  %s3159_s3 = inlined_call_operand.hbm [shape: f32[256,128], index: 3, kind: input, shape index: {}]   ;;  %s3160_s4 = inlined_call_operand.vmem [shape: f32[1,128], index: 4, kind: input, shape index: {}]   ;;  %s3161_s5 = inlined_call_operand.hbm [shape: f32[128,128], index: 5, kind: input, shape index: {}]   ;;  %s3162_s6 = inlined_call_operand.vmem [shape: f32[1,128], index: 6, kind: input, shape index: {}]   ;;  %s3163_s7 = inlined_call_operand.hbm [shape: f32[256,128], index: 7, kind: input, shape index: {}]   ;;  %s3164_s8 = inlined_call_operand.vmem [shape: f32[1,128], index: 8, kind: input, shape index: {}]   ;;  %s3165_s9 = inlined_call_operand.hbm [shape: f32[256,128], index: 9, kind: input, shape index: {}]   ;;  %s3166_s10 = inlined_call_operand.vmem [shape: f32[1,128], index: 10, kind: input, shape index: {}]   ;;  %s3167_s11 = inlined_call_operand.hbm [shape: f32[256,128], index: 11, kind: input, shape index: {}]   ;;  %s3168_s12 = inlined_call_operand.vmem [shape: f32[1,128], index: 12, kind: input, shape index: {}]   ;;  %s3169_s13 = inlined_call_operand.hbm [shape: f32[256,128], index: 13, kind: input, shape index: {}]   ;;  %s3170_s14 = inlined_call_operand.vmem [shape: f32[1,128], index: 14, kind: input, shape index: {}]   ;;  %s3171_s15 = inlined_call_operand.hbm [shape: f32[128,128], index: 15, kind: input, shape index: {}]   ;;  %s3172_s16 = inlined_call_operand.vmem [shape: f32[1,128], index: 16, kind: input, shape index: {}]   ;;  %s3173_s17 = inlined_call_operand.hbm [shape: f32[2,16,128], index: 17, kind: output, shape index: {}]  }
   0x1   :  { %3182 = sst [smem:[#allocation24_spill]] %s3156_s0 }
   0x2   :  { %3183 = sst [smem:[#allocation25_spill]] %s3157_s1 }
   0x3   :  { %3184 = sst [smem:[#allocation26_spill]] %s3159_s3 }
   0x4   :  { %3185 = sst [smem:[#allocation27_spill]] %s3161_s5 }
   0x5   :  { %3186 = sst [smem:[#allocation28_spill]] %s3163_s7 }
   0x6   :  { %3187 = sst [smem:[#allocation29_spill]] %s3165_s9 }
   0x7   :  { %3188 = sst [smem:[#allocation30_spill]] %s3167_s11 }
   0x8   :  { %3189 = sst [smem:[#allocation31_spill]] %s3169_s13 }
   0x9   :  { %3190 = sst [smem:[#allocation32_spill]] %s3170_s14 }
   0xa   :  { %3191 = sst [smem:[#allocation33_spill]] %s3171_s15 }
   0xb   :  { %3192 = sst [smem:[#allocation34_spill]] %s3172_s16 }
   0xc   :  { %3193 = sst [smem:[#allocation35_spill]] %s3173_s17 }
   0xd   :  { %22 = vsyncpa [#allocation3], 0 }
   0xe   :  { %24 = vsyncpa [#allocation3 + $0x1], 0 }
   0xf   :  { %25 = vsyncpa [#allocation6], 0 }
  0x10   :  { %26 = vsyncpa [#allocation9], 0 }
  0x11   :  { %27 = vsyncpa [#allocation12], 0 }
  0x12   :  { %28 = vsyncpa [#allocation15], 0 }
  0x13   :  { %29 = vsyncpa [#allocation4], 0 }
  0x14   :  { %31 = vsyncpa [#allocation4 + $0x1], 0  ;;  %s2786_s24 = smov 0   ;;  %s2788_s25 = smov 0  }
  0x15   :  { %s2790_s26 = smov 0   ;;  %s2792_s27 = smov 0  }
  0x16 LB: > { %s2682_s28 = smov [#allocation5]   ;;  %s2807_s0 = sadd.s32 4294967295, %s2680_s27   ;;  %s2680_s27 = sphi %s2792_s27, %s3232_s27   ;;  %s2676_s26 = sphi %s2790_s26, %s3231_s26   ;;  %s2672_s25 = sphi %s2788_s25, %s3230_s25   ;;  %s2668_s24 = sphi %s2786_s24, %s3229_s24  }
  0x17   : > { %s442_s29 = sshll.u32 %s2682_s28, 4  ;;  %p1845_p0 = scmp.ge.s32.totalorder %s2680_s27, 1  ;;  %s443_s29 = int_to_ptr.vmem [resolvable:$true] %s442_s29 }
  0x18   : > { %p3178_p1 = scmp.eq.s32.totalorder %s2807_s0, 0  ;;  %p430_p2 = scmp.lt.s32.totalorder %s2680_s27, 3 }
  0x19   : > { %s2683_s18 = smov [#allocation8]   ;;  %s2684_s20 = smov [#allocation11]  }
  0x1a   : > { %p2812_p3 = pnand %p1845_p0, %p430_p2  ;;  %s474_s19 = sshll.u32 %s2683_s18, 4  ;;  %s2825_s19 = int_to_ptr.vmem [resolvable:$true] %s474_s19 }
  0x1b   : > { %s506_s21 = sshll.u32 %s2684_s20, 4  ;;  %s2375_s23 = scalar_lea.vmem %s443_s29, 4096  ;;  %s2827_s21 = int_to_ptr.vmem [resolvable:$true] %s506_s21 }
  0x1c   : > { %s3194_s30 = scalar_select %p2812_p3, 1, 0 }
  0x1d   : > { %p2269_p5 = pneg %p2812_p3  ;;  %p2376_p8 = scmp.ne.s32.totalorder %s443_s29, %s2375_s23 }
  0x1e   : > { %p2383_p11 = scmp.lt.s32.totalorder %s443_s29, %s443_s29  ;;  %p2384_p12 = scmp.lt.s32.totalorder %s2375_s23, %s2375_s23 }
  0x1f   : > { %p2821_p6 = pnand %p2269_p5, %p3178_p1 }
  0x20   : > { %p2385_p13 = por %p2384_p12, %p2383_p11 }
  0x21   : > { %p2831_p7 = pneg %p2821_p6 }
  0x23   : > { %p2378_p9 = pnand %p2376_p8, %p2831_p7 }
  0x25   : > { %p2379_p10 = pneg %p2378_p9 }
  0x27   : > { %p2386_p0 = pnand %p2385_p13, %p2379_p10 }
  0x29   : > { %2389 = shalt.err (!%p2386_p0)
}
  0x2a   : > { %s3176_s28 = smov 128   ;;  %s3177_s18 = smov 8  }
  0x2b   : > { %s3197_s16 = sld [smem:[#allocation25_spill]]  ;;  %s2401_s14 = scalar_lea.vmem %s2825_s19, 2048 }
  0x2c   : > { %p2402_p2 = scmp.ne.s32.totalorder %s2825_s19, %s2401_s14  ;;  %p2409_p9 = scmp.lt.s32.totalorder %s2825_s19, %s2825_s19 }
  0x2d   : > { %p2410_p10 = scmp.lt.s32.totalorder %s2401_s14, %s2401_s14 }
  0x2e   : > { %p2404_p5 = pnand %p2402_p2, %p2831_p7 }
  0x2f   : > { %p2411_p11 = por %p2410_p10, %p2409_p9 }
  0x30   : > { %p2405_p8 = pneg %p2404_p5 }
  0x31   : > { %2272 = dma.hbm_to_vmem [thread:$0]  (!%p2821_p6), %s3197_s16, 4096, %s443_s29, [#allocation6], %s3176_s28, %s3176_s28, %s3177_s18  }
  0x32   : > { %p2412_p12 = pnand %p2411_p11, %p2405_p8 }
  0x34   : > { %2415 = shalt.err (!%p2412_p12)
}
  0x35   : > { %s3198_s5 = sld [smem:[#allocation27_spill]]  ;;  %s2427_s16 = scalar_lea.vmem %s2827_s21, 4096 }
  0x36   : > { %p2428_p13 = scmp.ne.s32.totalorder %s2827_s21, %s2427_s16  ;;  %p2435_p5 = scmp.lt.s32.totalorder %s2827_s21, %s2827_s21 }
  0x37   : > { %p2436_p8 = scmp.lt.s32.totalorder %s2427_s16, %s2427_s16 }
  0x38   : > { %p2430_p0 = pnand %p2428_p13, %p2831_p7 }
  0x39   : > { %p2437_p9 = por %p2436_p8, %p2435_p5 }
  0x3a   : > { %p2431_p2 = pneg %p2430_p0 }
  0x3b   : > { %2278 = dma.hbm_to_vmem [thread:$0]  (!%p2821_p6), %s3198_s5, 2048, %s2825_s19, [#allocation9], %s3176_s28, %s3176_s28, %s3177_s18  }
  0x3c   : > { %p2438_p10 = pnand %p2437_p9, %p2431_p2 }
  0x3e   : > { %2441 = shalt.err (!%p2438_p10)
}
  0x3f   : > { %s3199_s9 = sld [smem:[#allocation29_spill]]  ;;  %s2687_s19 = smov [#allocation14]  }
  0x40   : > { %s538_s20 = sshll.u32 %s2687_s19, 4  ;;  %s2688_s23 = smov [#allocation7]   ;;  %s539_s20 = int_to_ptr.vmem [resolvable:$true] %s538_s20 }
  0x41   : > { %s458_s17 = sshll.u32 %s2688_s23, 4  ;;  %s2453_s16 = scalar_lea.vmem %s539_s20, 4096  ;;  %s459_s17 = int_to_ptr.vmem [resolvable:$true] %s458_s17 }
  0x42   : > { %p2454_p11 = scmp.ne.s32.totalorder %s539_s20, %s2453_s16  ;;  %p2461_p0 = scmp.lt.s32.totalorder %s539_s20, %s539_s20 }
  0x43   : > { %p2462_p2 = scmp.lt.s32.totalorder %s2453_s16, %s2453_s16 }
  0x44   : > { %p2456_p12 = pnand %p2454_p11, %p2831_p7 }
  0x45   : > { %2284 = dma.hbm_to_vmem [thread:$0]  (!%p2821_p6), %s3199_s9, 4096, %s2827_s21, [#allocation12], %s3176_s28, %s3176_s28, %s3177_s18  }
  0x46   : > { %p2457_p13 = pneg %p2456_p12  ;;  %p2463_p5 = por %p2462_p2, %p2461_p0 }
  0x48   : > { %p2464_p8 = pnand %p2463_p5, %p2457_p13 }
  0x4a   : > { %2467 = shalt.err (!%p2464_p8)
}
  0x4b   : > { %s3200_s13 = sld [smem:[#allocation31_spill]]  ;;  %s2479_s29 = scalar_lea.vmem %s459_s17, 4096 }
  0x4c   : > { %p2480_p9 = scmp.ne.s32.totalorder %s459_s17, %s2479_s29  ;;  %p2487_p12 = scmp.lt.s32.totalorder %s459_s17, %s459_s17 }
  0x4d   : > { %p2488_p0 = scmp.lt.s32.totalorder %s2479_s29, %s2479_s29 }
  0x4e   : > { %p2482_p10 = pnand %p2480_p9, %p2831_p7 }
  0x4f   : > { %p2489_p13 = por %p2488_p0, %p2487_p12 }
  0x50   : > { %p2483_p11 = pneg %p2482_p10 }
  0x51   : > { %2290 = dma.hbm_to_vmem [thread:$0]  (!%p2821_p6), %s3200_s13, 4096, %s539_s20, [#allocation15], %s3176_s28, %s3176_s28, %s3177_s18  }
  0x52   : > { %p2490_p2 = pnand %p2489_p13, %p2483_p11 }
  0x54   : > { %2493 = shalt.err (!%p2490_p2)
}
  0x55   : > { %s3201_s3 = sld [smem:[#allocation26_spill]]  ;;  %s2689_s20 = smov [#allocation10]  }
  0x56   : > { %s490_s16 = sshll.u32 %s2689_s20, 4  ;;  %s2690_s21 = smov [#allocation13]   ;;  %s491_s16 = int_to_ptr.vmem [resolvable:$true] %s490_s16 }
  0x57   : > { %s522_s14 = sshll.u32 %s2690_s21, 4  ;;  %s2505_s5 = scalar_lea.vmem %s491_s16, 4096  ;;  %s523_s14 = int_to_ptr.vmem [resolvable:$true] %s522_s14 }
  0x58   : > { %p2506_p5 = scmp.ne.s32.totalorder %s491_s16, %s2505_s5  ;;  %p2513_p10 = scmp.lt.s32.totalorder %s491_s16, %s491_s16 }
  0x59   : > { %p2514_p11 = scmp.lt.s32.totalorder %s2505_s5, %s2505_s5 }
  0x5a   : > { %p2508_p8 = pnand %p2506_p5, %p2831_p7 }
  0x5b   : > { %2275 = dma.hbm_to_vmem [thread:$0]  (!%p2821_p6), %s3201_s3, 4096, %s459_s17, [#allocation6], %s3176_s28, %s3176_s28, %s3177_s18  }
  0x5c   : > { %p2509_p9 = pneg %p2508_p8  ;;  %p2515_p12 = por %p2514_p11, %p2513_p10 }
  0x5e   : > { %p2516_p0 = pnand %p2515_p12, %p2509_p9 }
  0x60   : > { %2519 = shalt.err (!%p2516_p0)
}
  0x61   : > { %s3202_s7 = sld [smem:[#allocation28_spill]]  ;;  %s2531_s19 = scalar_lea.vmem %s523_s14, 4096 }
  0x62   : > { %p2532_p13 = scmp.ne.s32.totalorder %s523_s14, %s2531_s19  ;;  %p2539_p8 = scmp.lt.s32.totalorder %s523_s14, %s523_s14 }
  0x63   : > { %p2540_p10 = scmp.lt.s32.totalorder %s2531_s19, %s2531_s19 }
  0x64   : > { %p2534_p2 = pnand %p2532_p13, %p2831_p7 }
  0x65   : > { %p2541_p9 = por %p2540_p10, %p2539_p8 }
  0x66   : > { %p2535_p5 = pneg %p2534_p2 }
  0x67   : > { %2281 = dma.hbm_to_vmem [thread:$0]  (!%p2821_p6), %s3202_s7, 4096, %s491_s16, [#allocation9], %s3176_s28, %s3176_s28, %s3177_s18  }
  0x68   : > { %p2542_p11 = pnand %p2541_p9, %p2535_p5 }
  0x6a   : > { %2545 = shalt.err (!%p2542_p11)
}
  0x6b   : > { %s3203_s11 = sld [smem:[#allocation30_spill]]  ;;  %s2691_s20 = smov [#allocation16]  }
  0x6c   : > { %s554_s16 = sshll.u32 %s2691_s20, 4  ;;  %s555_s16 = int_to_ptr.vmem [resolvable:$true] %s554_s16 }
  0x6d   : > { %s2557_s21 = scalar_lea.vmem %s555_s16, 2048  ;;  %p2565_p2 = scmp.lt.s32.totalorder %s555_s16, %s555_s16 }
  0x6e   : > { %p2558_p12 = scmp.ne.s32.totalorder %s555_s16, %s2557_s21  ;;  %p2566_p5 = scmp.lt.s32.totalorder %s2557_s21, %s2557_s21 }
  0x70   : > { %p2560_p0 = pnand %p2558_p12, %p2831_p7  ;;  %p2567_p8 = por %p2566_p5, %p2565_p2 }
  0x71   : > { %2287 = dma.hbm_to_vmem [thread:$0]  (!%p2821_p6), %s3203_s11, 4096, %s523_s14, [#allocation12], %s3176_s28, %s3176_s28, %s3177_s18  }
  0x72   : > { %p2561_p13 = pneg %p2560_p0 }
  0x74   : > { %p2568_p10 = pnand %p2567_p8, %p2561_p13 }
  0x76   : > { %2571 = shalt.err (!%p2568_p10)
}
  0x77   : > { %s3204_s15 = sld [smem:[#allocation33_spill]]  ;;  %s1844_s1 = sadd.s32 4294967294, %s2680_s27  }
  0x78   : > { %s2927_s22 = sadd.s32 1, %s2680_s27   ;;  %s44_s19 = sadd.s32 1, %s2676_s26 }
  0x79   : > { %s41_s29 = ssub.s32 %s2680_s27, %s2927_s22  ;;  %p51_p9 = scmp.ne.s32.totalorder %s2676_s26, %s2672_s25 }
  0x7a   : > { %p42_p7 = scmp.eq.s32.totalorder %s41_s29, 0  ;;  %p52_p11 = scmp.eq.s32.totalorder %s2680_s27, 0 }
  0x7b   : > { %p57_p12 = scmp.ne.s32.totalorder %s2672_s25, %s2668_s24  ;;  %p417_p13 = scmp.eq.s32.totalorder %s2807_s0, 1 }
  0x7c   : > { %s2938_s5 = scalar_select %p42_p7, %s2676_s26, %s44_s19  }
  0x7d   : > { %2293 = dma.hbm_to_vmem [thread:$0]  (!%p2821_p6), %s3204_s15, 2048, %s555_s16, [#allocation15], %s3176_s28, %s3176_s28, %s3177_s18  }
  0x7e   : > { %p2940_p0 = por %p52_p11, %p51_p9  ;;  %p2946_p6 = por %p3178_p1, %p57_p12 }
  0x7f   : > { %p423_p2 = scmp.eq.s32.totalorder %s1844_s1, 1  ;;  %p2310_p5 = scmp.lt.s32.totalorder %s2680_s27, 2 }
  0x80   : > { %s3206_s20 = scalar_select %p2946_p6, 1, 0 }
  0x81   : > { %s571_s16 = sand.u32 1, %s2676_s26   ;;  %p2953_p8 = por %p417_p13, %p51_p9 }
  0x82   : > { %p2957_p10 = por %p423_p2, %p57_p12  ;;  %s1855_s14 = sshll.u32 %s571_s16, 4 }
  0x83   : > { %s3207_s21 = scalar_select %p2953_p8, 1, 0 }
  0x84   : > { %s3208_s17 = scalar_select %p2957_p10, 1, 0 }
  0x85   : > { %s1894_s29 = sshll.u32 %s2680_s27, 8  ;;  %s3209_s18 = sld [smem:[#allocation24_spill]] }
  0x86   : > { %s575_s1 = scalar_lea.vmem [#allocation2], %s1855_s14  ;;  %p2971_p7 = pnand %p2310_p5, %p2940_p0 }
  0x87   : > { %s582_s7 = sshll.u32 %s575_s1, 4  ;;  %s2975_s11 = scalar_lea.sflag [#allocation3], %s571_s16  ;;  %s2967_s7 = int_to_ptr.vmem [resolvable:$true] %s582_s7 }
  0x88   : > { %p2574_p11 = pneg %p2971_p7 }
  0x8b   : > { %s2965_s3 = scalar_lea.hbm %s3209_s18, %s1894_s29  ;;  %s2577_s14 = scalar_lea.hbm %s3209_s18, 512 }
  0x8c   : > { %s2572_s13 = scalar_lea.hbm %s2965_s3, 256  ;;  %p2578_p0 = scmp.lt.s32.totalorder %s2965_s3, %s3209_s18 }
  0x8d   : > { %p2573_p9 = scmp.ne.s32.totalorder %s2965_s3, %s2572_s13  ;;  %p2579_p2 = scmp.lt.s32.totalorder %s2577_s14, %s2572_s13 }
  0x8f   : > { %p2575_p12 = pnand %p2574_p11, %p2573_p9  ;;  %p2580_p5 = por %p2579_p2, %p2578_p0 }
  0x91   : > { %p2576_p13 = pneg %p2575_p12 }
  0x93   : > { %p2581_p4 = pnand %p2580_p5, %p2576_p13 }
  0x95   : > { %2584 = shalt.err (!%p2581_p4)
}
  0x96   : > { %s2585_s23 = scalar_lea.vmem %s2967_s7, 256  ;;  %s2692_s16 = smov [#allocation2]  }
  0x97   : > { %p2586_p1 = scmp.ne.s32.totalorder %s2967_s7, %s2585_s23  ;;  %s2590_s15 = sshll.u32 %s2692_s16, 4  ;;  %s2591_s15 = int_to_ptr.vmem [resolvable:$false] %s2590_s15 }
  0x98   : > { %s2592_s28 = scalar_lea.vmem %s2591_s15, 512  ;;  %p2593_p12 = scmp.lt.s32.totalorder %s2967_s7, %s2591_s15 }
  0x99   : > { %p2588_p10 = pnand %p2586_p1, %p2574_p11  ;;  %p2594_p8 = scmp.lt.s32.totalorder %s2592_s28, %s2585_s23 }
  0x9b   : > { %p2589_p9 = pneg %p2588_p10  ;;  %p2595_p6 = por %p2594_p8, %p2593_p12 }
  0x9d   : > { %p2596_p3 = pnand %p2595_p6, %p2589_p9 }
  0x9f   : > { %2599 = shalt.err (!%p2596_p3)
}
  0xa0   : > { %s3211_s13 = smov 8   ;;  %s3212_s29 = smov 128  }
  0xa1   : > { %2297 = dma.hbm_to_vmem [thread:$0]  (!%p2971_p7), %s2965_s3, 256, %s2967_s7, %s2975_s11, %s3212_s29, %s3212_s29, %s3211_s13  }
  0xa2   : > { %p3213_p1 = scmp.ne.s32.totalorder %s3194_s30, 0 }
  0xa3   : > { %s3002_s14 = sand.u32 (!%p3213_p1), 1, %s2672_s25   ;;  %p3214_p3 = scmp.ne.s32.totalorder (!%p3213_p1), %s3206_s20, 0 }
  0xa4   : > { %594 = sbr.rel (%p3213_p1) target bundleno = 1486 (0x5ce), region = 88  ;;  %s1859_s15 = sshll.u32 (!%p3213_p1), %s3002_s14, 4 }
  0xa5   : > { %s597_s19 = scalar_lea.sflag (!%p3213_p1), [#allocation3], %s3002_s14  ;;  %s3008_s9 = scalar_lea.vmem (!%p3213_p1), [#allocation2], %s1859_s15 }
  0xa9   : > { %2643 = dma.done.wait (%p3214_p3), %s597_s19, 256  }
  0xaa   : > { %2645 = vsyncadd (%p3214_p3), %s597_s19, 4294967040  ;;  %p3215_p4 = scmp.eq.s32.totalorder %s2807_s0, 0 }
  0xac   : > { %2647 = dma.done.wait (%p3215_p4), [#allocation6], 8192   ;;  %p3216_p6 = pmov %p3215_p4 }
  0xad   : > { %p3217_p8 = pmov %p3215_p4 }
  0xae   : > { %2649 = vsyncadd (%p3216_p6), [#allocation6], 4294959104 }
  0xaf   : > { %2651 = dma.done.wait (%p3217_p8), [#allocation9], 6144   ;;  %p3218_p10 = pmov %p3215_p4 }
  0xb0   : > { %p3219_p7 = pmov %p3215_p4 }
  0xb1   : > { %2653 = vsyncadd (%p3218_p10), [#allocation9], 4294961152 }
  0xb2   : > { %2655 = dma.done.wait (%p3219_p7), [#allocation12], 8192   ;;  %p3220_p11 = pmov %p3215_p4 }
  0xb3   : > { %p3221_p13 = pmov %p3215_p4 }
  0xb4   : > { %2657 = vsyncadd (%p3220_p11), [#allocation12], 4294959104 }
  0xb5   : > { %2659 = dma.done.wait (%p3221_p13), [#allocation15], 6144   ;;  %p3222_p0 = pmov %p3215_p4 }
  0xb6   : > { %v741_v0 = vld [vmem:[#allocation5 + $0xf8] sm:$0xff]  ;;  %v740_v2 = vld [vmem:[#allocation5 + $0xf0] sm:$0xff]  ;;  %v739_v4 = vld [vmem:[#allocation5 + $0xe8] sm:$0xff]  ;;  %v683_v39 = vlaneseq  ;;  %vm698_vm0 = vcmask 1040384   ;;  %vm1059_vm2 = vcmask 1041408   ;;  %vm1322_vm4 = vcmask 1043456  }
  0xb7   : > { %2661 = vsyncadd (%p3222_p0), [#allocation15], 4294961152  ;;  %v725_v1 = vld [vmem:[#allocation5 + $0x78] sm:$0xff]  ;;  %1899 = vmatprep.subr.mxu0 %v741_v0  ;;  %v724_v3 = vld [vmem:[#allocation5 + $0x70] sm:$0xff]  ;;  %s3223_s7 = sld [smem:[#allocation32_spill]]  ;;  %s682_s1 = scalar_lea.vmem [#allocation17], %s1859_s15 }
  0xb8   : > { %1900 = vmatpush3.msra.mxu0 %v725_v1  ;;  %v723_v5 = vld [vmem:[#allocation5 + $0x68] sm:$0xff]  ;;  %v738_v6 = vld [vmem:[#allocation5 + $0xe0] sm:$0xff]  ;;  %v737_v8 = vld [vmem:[#allocation5 + $0xd8] sm:$0xff]  ;;  %v3038_v49 = vshrl.u32 %v683_v39, 7  ;;  %s3224_s20 = sld [smem:[#allocation34_spill]]  ;;  %s1695_s23 = sshll.u32 %s682_s1, 4  ;;  %s3108_s23 = int_to_ptr.vmem [resolvable:$true] %s1695_s23 }
  0xb9   : > { %1901 = vmatprep.subr.mxu0 %v740_v2  ;;  %v722_v7 = vld [vmem:[#allocation5 + $0x60] sm:$0xff]  ;;  %v721_v9 = vld [vmem:[#allocation5 + $0x58] sm:$0xff]  ;;  %v736_v10 = vld [vmem:[#allocation5 + $0xd0] sm:$0xff]  ;;  %s1895_s16 = sshll.u32 %s2807_s0, 8  ;;  %s3225_s29 = sld [smem:[#allocation35_spill]] }
  0xba   : > { %1902 = vmatpush3.msra.mxu0 %v724_v3  ;;  %v720_v11 = vld [vmem:[#allocation5 + $0x50] sm:$0xff]  ;;  %v735_v12 = vld [vmem:[#allocation5 + $0xc8] sm:$0xff]  ;;  %v868_v15 = vld [vmem:[#allocation7 + $0xf8] sm:$0xff]  ;;  %vm1896_vm1 = vcmp.ge.s32.totalorder %v3038_v49, 1  ;;  %vm1897_vm3 = vcmp.ge.s32.totalorder %v3038_v49, 2  ;;  %vm1898_vm5 = vcmp.ge.s32.totalorder %v3038_v49, 4 }
  0xbb   : > { %1903 = vmatprep.subr.mxu0 %v739_v4  ;;  %v3031_v13 = vld [vmem:[%s3008_s9] sm:$0xff]  ;;  %v719_v14 = vld [vmem:[#allocation5 + $0x48] sm:$0xff]  ;;  %v852_v16 = vld [vmem:[#allocation7 + $0x78] sm:$0xff]  ;;  %1937 = vmatprep.subr.mxu1 %v868_v15  ;;  %s1682_s15 = scalar_lea.sflag [#allocation4], %s3002_s14  ;;  %p3226_p5 = scmp.ne.s32.totalorder %s3207_s21, 0 }
  0xbc   : > { %1904 = vmatpush3.msra.mxu0 %v723_v5  ;;  %813 = vmatprep.mubr.f32.mxu0 %v3031_v13  ;;  %v734_v17 = vld [vmem:[#allocation5 + $0xc0] sm:$0xff]  ;;  %v867_v18 = vld [vmem:[#allocation7 + $0xf0] sm:$0xff]  ;;  %v866_v21 = vld [vmem:[#allocation7 + $0xe8] sm:$0xff]  ;;  %v699_v48 = vrot.slane %v3031_v13, 7  ;;  %s2693_s0 = smov [#allocation17]  }
  0xbd   : > { %1905 = vmatprep.subr.mxu0 %v738_v6  ;;  %v851_v19 = vld [vmem:[#allocation7 + $0x70] sm:$0xff]  ;;  %v718_v20 = vld [vmem:[#allocation5 + $0x40] sm:$0xff]  ;;  %1938 = vmatpush3.msra.mxu1 %v852_v16  ;;  %v733_v22 = vld [vmem:[#allocation5 + $0xb8] sm:$0xff]  ;;  %s2604_s3 = sshll.u32 %s2693_s0, 4  ;;  %s2605_s3 = int_to_ptr.vmem [resolvable:$false] %s2604_s3 }
  0xbe   : > { %1906 = vmatpush3.msra.mxu0 %v722_v7  ;;  %1939 = vmatprep.subr.mxu1 %v867_v18  ;;  %v850_v23 = vld [vmem:[#allocation7 + $0x68] sm:$0xff]  ;;  %v717_v24 = vld [vmem:[#allocation5 + $0x38] sm:$0xff]  ;;  %v865_v25 = vld [vmem:[#allocation7 + $0xe0] sm:$0xff]  ;;  %p2607_p1 = scmp.lt.s32.totalorder %s3108_s23, %s2605_s3 }
  0xbf   : > { %1907 = vmatprep.subr.mxu0 %v737_v8  ;;  %1940 = vmatpush3.msra.mxu1 %v851_v19  ;;  %v732_v26 = vld [vmem:[#allocation5 + $0xb0] sm:$0xff]  ;;  %v849_v27 = vld [vmem:[#allocation7 + $0x60] sm:$0xff]  ;;  %v864_v29 = vld [vmem:[#allocation7 + $0xd8] sm:$0xff]  ;;  %s3113_s19 = scalar_lea.hbm %s3225_s29, %s1895_s16 }
  0xc0   : > { %1908 = vmatpush3.msra.mxu0 %v721_v9  ;;  %1941 = vmatprep.subr.mxu1 %v866_v21  ;;  %v716_v28 = vld [vmem:[#allocation5 + $0x30] sm:$0xff]  ;;  %v731_v30 = vld [vmem:[#allocation5 + $0xa8] sm:$0xff]  ;;  %v848_v31 = vld [vmem:[#allocation7 + $0x58] sm:$0xff] }
  0xc1   : > { %1909 = vmatprep.subr.mxu0 %v736_v10  ;;  %1942 = vmatpush3.msra.mxu1 %v850_v23  ;;  %v715_v32 = vld [vmem:[#allocation5 + $0x28] sm:$0xff]  ;;  %v863_v33 = vld [vmem:[#allocation7 + $0xd0] sm:$0xff]  ;;  %v730_v34 = vld [vmem:[#allocation5 + $0xa0] sm:$0xff] }
  0xc2   : > { %1910 = vmatpush3.msra.mxu0 %v720_v11  ;;  %1943 = vmatprep.subr.mxu1 %v865_v25  ;;  %v847_v35 = vld [vmem:[#allocation7 + $0x50] sm:$0xff]  ;;  %v714_v36 = vld [vmem:[#allocation5 + $0x20] sm:$0xff]  ;;  %v862_v37 = vld [vmem:[#allocation7 + $0xc8] sm:$0xff] }
  0xc3   : > { %1911 = vmatprep.subr.mxu0 %v735_v12  ;;  %1944 = vmatpush3.msra.mxu1 %v849_v27  ;;  %v729_v38 = vld [vmem:[#allocation5 + $0x98] sm:$0xff]  ;;  %v846_v40 = vld [vmem:[#allocation7 + $0x48] sm:$0xff]  ;;  %v861_v43 = vld [vmem:[#allocation7 + $0xc0] sm:$0xff] }
  0xc4   : > { %1912 = vmatpush3.msra.mxu0 %v719_v14  ;;  %1945 = vmatprep.subr.mxu1 %v864_v29  ;;  %v713_v41 = vld [vmem:[#allocation5 + $0x18] sm:$0xff]  ;;  %v728_v44 = vld [vmem:[#allocation5 + $0x90] sm:$0xff]  ;;  %v845_v45 = vld [vmem:[#allocation7 + $0x40] sm:$0xff] }
  0xc5   : > { %1913 = vmatprep.subr.mxu0 %v734_v17  ;;  %1946 = vmatpush3.msra.mxu1 %v848_v31  ;;  %v3035_v42 = vld [vmem:[%s3008_s9 + $0x8] sm:$0xff]  ;;  %v712_v46 = vld [vmem:[#allocation5 + $0x10] sm:$0xff]  ;;  %v726_v52 = vld [vmem:[#allocation5 + $0x80] sm:$0xff]  ;;  %s2600_s9 = scalar_lea.vmem %s3108_s23, 256 }
  0xc6   : > { %1914 = vmatpush3.msra.mxu0 %v718_v20  ;;  %1947 = vmatprep.subr.mxu1 %v863_v33  ;;  %v727_v47 = vld [vmem:[#allocation5 + $0x88] sm:$0xff]  ;;  %v695_v50 = vrot.slane %v3035_v42, 7  ;;  %v710_v53 = vld [vmem:[#allocation5] sm:$0xff]  ;;  %v968_v55 = vld [vmem:[#allocation8 + $0x78] sm:$0xff]  ;;  %p2601_p2 = scmp.ne.s32.totalorder %s3108_s23, %s2600_s9 }
  0xc7   : > { %1915 = vmatprep.subr.mxu0 %v733_v22  ;;  %1948 = vmatpush3.msra.mxu1 %v847_v35  ;;  %v711_v51 = vld [vmem:[#allocation5 + $0x8] sm:$0xff]  ;;  %v967_v56 = vld [vmem:[#allocation8 + $0x70] sm:$0xff]  ;;  %v965_v59 = vld [vmem:[#allocation8 + $0x60] sm:$0xff] }
  0xc8   : > { %1916 = vmatpush3.msra.mxu0 %v717_v24  ;;  %1949 = vmatprep.subr.mxu1 %v862_v37  ;;  %v703_v54 = vsel %vm698_vm0, %v695_v50, %v699_v48  ;;  %v700_v57 = vsel %vm698_vm0, %v699_v48, %v695_v50  ;;  %v966_v58 = vld [vmem:[#allocation8 + $0x68] sm:$0xff]  ;;  %v964_v60 = vld [vmem:[#allocation8 + $0x58] sm:$0xff]  ;;  %v963_v61 = vld [vmem:[#allocation8 + $0x50] sm:$0xff]  ;;  %p2602_p9 = pnand %p2601_p2, %p3226_p5 }
  0xc9   : > { %1917 = vmatprep.subr.mxu0 %v732_v26  ;;  %1950 = vmatpush3.msra.mxu1 %v846_v40  ;;  %v860_v62 = vld [vmem:[#allocation7 + $0xb8] sm:$0xff]  ;;  %v962_v63 = vld [vmem:[#allocation8 + $0x48] sm:$0xff]  ;;  %v859_v1 = vld [vmem:[#allocation7 + $0xb0] sm:$0xff] }
  0xca   : > { %1918 = vmatpush3.msra.mxu0 %v716_v28  ;;  %1951 = vmatprep.subr.mxu1 %v861_v43  ;;  %v844_v0 = vld [vmem:[#allocation7 + $0x38] sm:$0xff]  ;;  %v961_v2 = vld [vmem:[#allocation8 + $0x40] sm:$0xff]  ;;  %v843_v3 = vld [vmem:[#allocation7 + $0x30] sm:$0xff]  ;;  %p2603_p12 = pneg %p2602_p9 }
  0xcb   : > { %1919 = vmatprep.subr.mxu0 %v731_v30  ;;  %1952 = vmatpush3.msra.mxu1 %v845_v45  ;;  %v858_v4 = vld [vmem:[#allocation7 + $0xa8] sm:$0xff]  ;;  %v960_v5 = vld [vmem:[#allocation8 + $0x38] sm:$0xff]  ;;  %v857_v7 = vld [vmem:[#allocation7 + $0xa0] sm:$0xff] }
  0xcc   : > { %1920 = vmatpush3.msra.mxu0 %v715_v32  ;;  %1953 = vmatprep.subr.mxu1 %v860_v62  ;;  %v842_v6 = vld [vmem:[#allocation7 + $0x28] sm:$0xff]  ;;  %v959_v8 = vld [vmem:[#allocation8 + $0x30] sm:$0xff]  ;;  %v841_v9 = vld [vmem:[#allocation7 + $0x20] sm:$0xff] }
  0xcd   : > { %1921 = vmatprep.subr.mxu0 %v730_v34  ;;  %1954 = vmatpush3.msra.mxu1 %v844_v0  ;;  %v856_v10 = vld [vmem:[#allocation7 + $0x98] sm:$0xff]  ;;  %v958_v11 = vld [vmem:[#allocation8 + $0x28] sm:$0xff]  ;;  %v957_v14 = vld [vmem:[#allocation8 + $0x20] sm:$0xff] }
  0xce   : > { %1922 = vmatpush3.msra.mxu0 %v714_v36  ;;  %1955 = vmatprep.subr.mxu1 %v859_v1  ;;  %v840_v12 = vld [vmem:[#allocation7 + $0x18] sm:$0xff]  ;;  %v839_v15 = vld [vmem:[#allocation7 + $0x10] sm:$0xff]  ;;  %v854_v16 = vld [vmem:[#allocation7 + $0x88] sm:$0xff] }
  0xcf   : > { %1923 = vmatprep.subr.mxu0 %v729_v38  ;;  %1956 = vmatpush3.msra.mxu1 %v843_v3  ;;  %v956_v17 = vld [vmem:[#allocation8 + $0x18] sm:$0xff]  ;;  %v838_v18 = vld [vmem:[#allocation7 + $0x8] sm:$0xff]  ;;  %v853_v19 = vld [vmem:[#allocation7 + $0x80] sm:$0xff] }
  0xd0   : > { %1924 = vmatpush3.msra.mxu0 %v713_v41  ;;  %1957 = vmatprep.subr.mxu1 %v858_v4  ;;  %v955_v20 = vld [vmem:[#allocation8 + $0x10] sm:$0xff]  ;;  %v837_v21 = vld [vmem:[#allocation7] sm:$0xff]  ;;  %v954_v22 = vld [vmem:[#allocation8 + $0x8] sm:$0xff] }
  0xd1   : > { %1925 = vmatprep.subr.mxu0 %v728_v44  ;;  %1958 = vmatpush3.msra.mxu1 %v842_v6  ;;  %v953_v23 = vld [vmem:[#allocation8] sm:$0xff]  ;;  %v1102_v24 = vld [vmem:[#allocation10 + $0xf8] sm:$0xff]  ;;  %v1101_v40 = vld [vmem:[#allocation10 + $0xf0] sm:$0xff] }
  0xd2   : > { %1926 = vmatpush3.msra.mxu0 %v712_v46  ;;  %1959 = vmatprep.subr.mxu1 %v857_v7  ;;  %v1869_v27 = vld [vmem:[%s3158_s2] ss:$0 sm:$0xff]  ;;  %v1086_v38 = vld [vmem:[#allocation10 + $0x78] sm:$0xff]  ;;  %v1085_v41 = vld [vmem:[#allocation10 + $0x70] sm:$0xff] }
  0xd3   : > { %1927 = vmatprep.subr.mxu0 %v727_v47  ;;  %1960 = vmatpush3.msra.mxu1 %v841_v9  ;;  %v1084_v43 = vld [vmem:[#allocation10 + $0x68] sm:$0xff]  ;;  %v1099_v45 = vld [vmem:[#allocation10 + $0xe0] sm:$0xff]  ;;  %v1098_v47 = vld [vmem:[#allocation10 + $0xd8] sm:$0xff] }
  0xd4   : > { %1928 = vmatpush3.msra.mxu0 %v711_v51  ;;  %1961 = vmatprep.subr.mxu1 %v856_v10  ;;  %v1083_v46 = vld [vmem:[#allocation10 + $0x60] sm:$0xff]  ;;  %v1082_v48 = vld [vmem:[#allocation10 + $0x58] sm:$0xff]  ;;  %v1097_v50 = vld [vmem:[#allocation10 + $0xd0] sm:$0xff] }
  0xd5   : > { %1929 = vmatprep.subr.mxu0 %v726_v52  ;;  %1962 = vmatpush3.msra.mxu1 %v840_v12  ;;  %v1081_v51 = vld [vmem:[#allocation10 + $0x50] sm:$0xff]  ;;  %v1096_v52 = vld [vmem:[#allocation10 + $0xc8] sm:$0xff]  ;;  %v1091_v62 = vld [vmem:[#allocation10 + $0xa0] sm:$0xff] }
  0xd6   : > { %1930 = vmatpush3.msra.mxu0 %v710_v53  ;;  %v1080_v53 = vld [vmem:[#allocation10 + $0x48] sm:$0xff]  ;;  %v1090_v0 = vld [vmem:[#allocation10 + $0x98] sm:$0xff]  ;;  %v1073_v3 = vld [vmem:[#allocation10 + $0x10] sm:$0xff] }
  0xd7   : > { %1871 = vmatmul.mubr.msk.f32.vlgmr.msra.gmra.mxu0 %vm1896_vm1, %v703_v54  ;;  %2163 = vmatprep.subr.mxu0 %v968_v55  ;;  %v1095_v54 = vld [vmem:[#allocation10 + $0xc0] sm:$0xff]  ;;  %v1074_v1 = vld [vmem:[#allocation10 + $0x18] sm:$0xff]  ;;  %v1088_v4 = vld [vmem:[#allocation10 + $0x88] sm:$0xff] }
  0xd8   : > { %818 = vmatprep.mubr.f32.mxu0 %v3035_v42  ;;  %2164 = vmatpush3.msra.mxu0 %v968_v55  ;;  %v1079_v55 = vld [vmem:[#allocation10 + $0x40] sm:$0xff]  ;;  %v1213_v9 = vld [vmem:[#allocation11 + $0x78] sm:$0xff]  ;;  %v1228_v10 = vld [vmem:[#allocation11 + $0xf0] sm:$0xff] }
  0xd9   : > { %2165 = vmatprep.subr.mxu0 %v967_v56  ;;  %v1087_v6 = vld [vmem:[#allocation10 + $0x80] sm:$0xff]  ;;  %v1227_v12 = vld [vmem:[#allocation11 + $0xe8] sm:$0xff] }
  0xda   : > { %2166 = vmatpush3.msra.mxu0 %v967_v56  ;;  %v1094_v56 = vld [vmem:[#allocation10 + $0xb8] sm:$0xff]  ;;  %v1071_v7 = vld [vmem:[#allocation10] sm:$0xff] }
  0xdb   : > { %819 = vmatmul.mubr.f32.gmra.mxu0 %v700_v57  ;;  %2167 = vmatprep.subr.mxu0 %v966_v58  ;;  %v1078_v57 = vld [vmem:[#allocation10 + $0x38] sm:$0xff]  ;;  %v1888_v49 = vld [vmem:[%s3224_s20] ss:$0 sm:$0xff] }
  0xdc   : > { %2168 = vmatpush3.msra.mxu0 %v966_v58  ;;  %2195 = vmatprep.mubr.f32.mxu0 %v3031_v13  ;;  %v855_v13 = vld [vmem:[#allocation7 + $0x90] sm:$0xff] }
  0xdd   : > { %2169 = vmatprep.subr.mxu0 %v965_v59  ;;  %1963 = vmatprep.subr.mxu1 %v855_v13  ;;  %v1093_v58 = vld [vmem:[#allocation10 + $0xb0] sm:$0xff]  ;;  %v1211_v13 = vld [vmem:[#allocation11 + $0x68] sm:$0xff] }
  0xde   : > { %2170 = vmatpush3.msra.mxu0 %v965_v59  ;;  %1964 = vmatpush3.msra.mxu1 %v839_v15  ;;  %v1077_v59 = vld [vmem:[#allocation10 + $0x30] sm:$0xff]  ;;  %v1210_v15 = vld [vmem:[#allocation11 + $0x60] sm:$0xff] }
  0xdf   : > { %2171 = vmatprep.subr.mxu0 %v964_v60  ;;  %1965 = vmatprep.subr.mxu1 %v854_v16  ;;  %v1225_v16 = vld [vmem:[#allocation11 + $0xd8] sm:$0xff] }
  0xe0   : > { %2172 = vmatpush3.msra.mxu0 %v964_v60  ;;  %1966 = vmatpush3.msra.mxu1 %v838_v18  ;;  %v1092_v60 = vld [vmem:[#allocation10 + $0xa8] sm:$0xff]  ;;  %v1224_v18 = vld [vmem:[#allocation11 + $0xd0] sm:$0xff] }
  0xe1   : > { %2173 = vmatprep.subr.mxu0 %v963_v61  ;;  %1967 = vmatprep.subr.mxu1 %v853_v19  ;;  %v1208_v19 = vld [vmem:[#allocation11 + $0x50] sm:$0xff] }
  0xe2   : > { %2174 = vmatpush3.msra.mxu0 %v963_v61  ;;  %1968 = vmatpush3.msra.mxu1 %v837_v21  ;;  %v1076_v61 = vld [vmem:[#allocation10 + $0x28] sm:$0xff] }
  0xe3   : > { %2175 = vmatprep.subr.mxu0 %v962_v63  ;;  %1993 = vmatprep.subr.mxu1 %v1102_v24  ;;  %v1207_v21 = vld [vmem:[#allocation11 + $0x48] sm:$0xff] }
  0xe4   : > { %2176 = vmatpush3.msra.mxu0 %v962_v63  ;;  %v1075_v63 = vld [vmem:[#allocation10 + $0x20] sm:$0xff] }
  0xe5   : > { %2177 = vmatprep.subr.mxu0 %v961_v2 }
  0xe6   : > { %2178 = vmatpush3.msra.mxu0 %v961_v2  ;;  %v1089_v2 = vld [vmem:[#allocation10 + $0x90] sm:$0xff] }
  0xe7   : > { %2179 = vmatprep.subr.mxu0 %v960_v5 }
  0xe8   : > { %2180 = vmatpush3.msra.mxu0 %v960_v5  ;;  %v1072_v5 = vld [vmem:[#allocation10 + $0x8] sm:$0xff] }
  0xe9   : > { %2181 = vmatprep.subr.mxu0 %v959_v8 }
  0xea   : > { %2182 = vmatpush3.msra.mxu0 %v959_v8  ;;  %v1229_v8 = vld [vmem:[#allocation11 + $0xf8] sm:$0xff] }
  0xeb   : > { %2183 = vmatprep.subr.mxu0 %v958_v11 }
  0xec   : > { %2184 = vmatpush3.msra.mxu0 %v958_v11  ;;  %v1212_v11 = vld [vmem:[#allocation11 + $0x70] sm:$0xff] }
  0xed   : > { %2185 = vmatprep.subr.mxu0 %v957_v14 }
  0xee   : > { %2186 = vmatpush3.msra.mxu0 %v957_v14  ;;  %v1226_v14 = vld [vmem:[#allocation11 + $0xe0] sm:$0xff] }
  0xef   : > { %2187 = vmatprep.subr.mxu0 %v956_v17 }
  0xf0   : > { %2188 = vmatpush3.msra.mxu0 %v956_v17  ;;  %v1209_v17 = vld [vmem:[#allocation11 + $0x58] sm:$0xff] }
  0xf1   : > { %2189 = vmatprep.subr.mxu0 %v955_v20 }
  0xf2   : > { %2190 = vmatpush3.msra.mxu0 %v955_v20  ;;  %v1223_v20 = vld [vmem:[#allocation11 + $0xc8] sm:$0xff] }
  0xf3   : > { %2191 = vmatprep.subr.mxu0 %v954_v22 }
  0xf4   : > { %2192 = vmatpush3.msra.mxu0 %v954_v22  ;;  %v1222_v22 = vld [vmem:[#allocation11 + $0xc0] sm:$0xff] }
  0xf5   : > { %2193 = vmatprep.subr.mxu0 %v953_v23 }
  0xf6   : > { %2194 = vmatpush3.msra.mxu0 %v953_v23  ;;  %v1206_v23 = vld [vmem:[#allocation11 + $0x40] sm:$0xff] }
  0xf7   : > { %2196 = vmatmul.mubr.f32.vlgmr.msra.gmra.mxu0 %v3035_v42  ;;  %v1100_v42 = vld [vmem:[#allocation10 + $0xe8] sm:$0xff]  ;;  %2031 = vmatprep.subr.mxu0 %v1229_v8  ;;  %v1346_v8 = vld [vmem:[#allocation13 + $0x60] sm:$0xff] }
  0xf8   : > { %2032 = vmatpush3.msra.mxu0 %v1213_v9  ;;  %v1361_v9 = vld [vmem:[#allocation13 + $0xd8] sm:$0xff] }
  0xf9   : > { %2033 = vmatprep.subr.mxu0 %v1228_v10  ;;  %v1345_v10 = vld [vmem:[#allocation13 + $0x58] sm:$0xff] }
  0xfa   : > { %2034 = vmatpush3.msra.mxu0 %v1212_v11  ;;  %v1360_v11 = vld [vmem:[#allocation13 + $0xd0] sm:$0xff] }
  0xfb   : > { %2035 = vmatprep.subr.mxu0 %v1227_v12  ;;  %v1344_v12 = vld [vmem:[#allocation13 + $0x50] sm:$0xff] }
  0xfc   : > { %2036 = vmatpush3.msra.mxu0 %v1211_v13  ;;  %v1359_v13 = vld [vmem:[#allocation13 + $0xc8] sm:$0xff] }
  0xfd   : > { %2037 = vmatprep.subr.mxu0 %v1226_v14 }
  0xfe   : > { %2038 = vmatpush3.msra.mxu0 %v1210_v15  ;;  %v1876_v15 = vld [vmem:[%s3164_s8] ss:$0 sm:$0xff] }
  0xff   : > { %2039 = vmatprep.subr.mxu0 %v1225_v16 }
 0x100   : > { %2040 = vmatpush3.msra.mxu0 %v1209_v17 }
 0x101   : > { %2041 = vmatprep.subr.mxu0 %v1224_v18 }
 0x102   : > { %2042 = vmatpush3.msra.mxu0 %v1208_v19 }
 0x103   : > { %2043 = vmatprep.subr.mxu0 %v1223_v20 }
 0x104   : > { %2044 = vmatpush3.msra.mxu0 %v1207_v21 }
 0x105   : > { %2045 = vmatprep.subr.mxu0 %v1222_v22 }
 0x106   : > { %2046 = vmatpush3.msra.mxu0 %v1206_v23 }
 0x197   : > { %v1931_v25 = vpop.f32.mrf.mxu0 }
 0x199   : > { %v1932_v26 = vpop.f32.mrf.mxu0 }
 0x19a   : > { %v1933_v28 = vadd.f32 %v1932_v26, %v1931_v25  ;;  %v1872_v26 = vld [vmem:[%s3160_s4] ss:$0 sm:$0xff] }
 0x19b   : > { %v1934_v29 = vpop.f32.mrf.mxu0 }
 0x19c   : > { %v816_v30 = vadd.f32 %v1933_v28, %v1869_v27  ;;  %v1875_v28 = vld [vmem:[%s3162_s6] ss:$0 sm:$0xff] }
 0x19d   : > { %v1935_v31 = vpop.f32.mrf.mxu0 }
 0x19e   : > { %v1936_v32 = vadd.f32 %v1935_v31, %v1934_v29  ;;  %v824_v33 = vmax.f32 %v816_v30, 0.0 }
 0x1a0   : > { %v821_v34 = vadd.f32 %v1936_v32, %v1869_v27  ;;  %940 = vmatprep.mubr.f32.mxu1 %v824_v33  ;;  %v830_v37 = vrot.slane %v824_v33, 7 }
 0x1a2   : > { %v825_v35 = vmax.f32 %v821_v34, 0.0 }
 0x1a4   : > { %v827_v36 = vrot.slane %v825_v35, 7 }
 0x1a6   : > { %v834_v39 = vsel %vm698_vm0, %v827_v36, %v830_v37  ;;  %v831_v44 = vsel %vm698_vm0, %v830_v37, %v827_v36 }
 0x1a7   : > { %1874 = vmatmul.mubr.msk.f32.vlgmr.msra.gmra.mxu1 %vm1896_vm1, %v834_v39 }
 0x1a8   : > { %945 = vmatprep.mubr.f32.mxu1 %v825_v35  ;;  %1994 = vmatpush3.msra.mxu1 %v1086_v38 }
 0x1a9   : > { %1995 = vmatprep.subr.mxu1 %v1101_v40 }
 0x1aa   : > { %1996 = vmatpush3.msra.mxu1 %v1085_v41 }
 0x1ab   : > { %946 = vmatmul.mubr.f32.gmra.mxu1 %v831_v44  ;;  %1997 = vmatprep.subr.mxu1 %v1100_v42 }
 0x1ac   : > { %1998 = vmatpush3.msra.mxu1 %v1084_v43 }
 0x1ad   : > { %1999 = vmatprep.subr.mxu1 %v1099_v45 }
 0x1ae   : > { %2000 = vmatpush3.msra.mxu1 %v1083_v46 }
 0x1af   : > { %2001 = vmatprep.subr.mxu1 %v1098_v47 }
 0x1b0   : > { %2002 = vmatpush3.msra.mxu1 %v1082_v48  ;;  %v1221_v48 = vld [vmem:[#allocation11 + $0xb8] sm:$0xff] }
 0x1b1   : > { %2003 = vmatprep.subr.mxu1 %v1097_v50  ;;  %2047 = vmatprep.subr.mxu0 %v1221_v48  ;;  %v1205_v50 = vld [vmem:[#allocation11 + $0x38] sm:$0xff]  ;;  %v1350_v48 = vld [vmem:[#allocation13 + $0x80] sm:$0xff] }
 0x1b2   : > { %2004 = vmatpush3.msra.mxu1 %v1081_v51  ;;  %2048 = vmatpush3.msra.mxu0 %v1205_v50  ;;  %v1220_v51 = vld [vmem:[#allocation11 + $0xb0] sm:$0xff]  ;;  %v1334_v50 = vld [vmem:[#allocation13] sm:$0xff] }
 0x1b3   : > { %2005 = vmatprep.subr.mxu1 %v1096_v52  ;;  %2049 = vmatprep.subr.mxu0 %v1220_v51  ;;  %v1204_v52 = vld [vmem:[#allocation11 + $0x30] sm:$0xff]  ;;  %v1592_v51 = vld [vmem:[#allocation16 + $0x78] sm:$0xff] }
 0x1b4   : > { %2006 = vmatpush3.msra.mxu1 %v1080_v53  ;;  %2050 = vmatpush3.msra.mxu0 %v1204_v52  ;;  %v1219_v53 = vld [vmem:[#allocation11 + $0xa8] sm:$0xff]  ;;  %v1492_v52 = vld [vmem:[#allocation14 + $0xf8] sm:$0xff] }
 0x1b5   : > { %2007 = vmatprep.subr.mxu1 %v1095_v54  ;;  %2051 = vmatprep.subr.mxu0 %v1219_v53  ;;  %v1203_v54 = vld [vmem:[#allocation11 + $0x28] sm:$0xff]  ;;  %v1476_v53 = vld [vmem:[#allocation14 + $0x78] sm:$0xff] }
 0x1b6   : > { %2008 = vmatpush3.msra.mxu1 %v1079_v55  ;;  %2052 = vmatpush3.msra.mxu0 %v1203_v54  ;;  %v1218_v55 = vld [vmem:[#allocation11 + $0xa0] sm:$0xff]  ;;  %v1491_v54 = vld [vmem:[#allocation14 + $0xf0] sm:$0xff] }
 0x1b7   : > { %2009 = vmatprep.subr.mxu1 %v1094_v56  ;;  %v2197_v24 = vpop.f32.mrf.mxu0  ;;  %2053 = vmatprep.subr.mxu0 %v1218_v55  ;;  %v1202_v56 = vld [vmem:[#allocation11 + $0x20] sm:$0xff]  ;;  %v1475_v55 = vld [vmem:[#allocation14 + $0x70] sm:$0xff] }
 0x1b8   : > { %2010 = vmatpush3.msra.mxu1 %v1078_v57  ;;  %v1048_v39 = vadd.f32 %v2197_v24, %v1875_v28  ;;  %2054 = vmatpush3.msra.mxu0 %v1202_v56  ;;  %v1217_v57 = vld [vmem:[#allocation11 + $0x98] sm:$0xff]  ;;  %v1490_v56 = vld [vmem:[#allocation14 + $0xe8] sm:$0xff] }
 0x1b9   : > { %2011 = vmatprep.subr.mxu1 %v1093_v58  ;;  %v1042_v29 = vpop.f32.mrf.mxu0  ;;  %2055 = vmatprep.subr.mxu0 %v1217_v57  ;;  %v1201_v58 = vld [vmem:[#allocation11 + $0x18] sm:$0xff]  ;;  %v1474_v57 = vld [vmem:[#allocation14 + $0x68] sm:$0xff] }
 0x1ba   : > { %2012 = vmatpush3.msra.mxu1 %v1077_v59  ;;  %v1043_v33 = vadd.f32 %v1875_v28, %v1042_v29  ;;  %2056 = vmatpush3.msra.mxu0 %v1201_v58  ;;  %v1216_v59 = vld [vmem:[#allocation11 + $0x90] sm:$0xff]  ;;  %v1343_v29 = vld [vmem:[#allocation13 + $0x48] sm:$0xff]  ;;  %v1489_v58 = vld [vmem:[#allocation14 + $0xe0] sm:$0xff] }
 0x1bb   : > { %2013 = vmatprep.subr.mxu1 %v1092_v60  ;;  %2057 = vmatprep.subr.mxu0 %v1216_v59  ;;  %v1200_v60 = vld [vmem:[#allocation11 + $0x10] sm:$0xff]  ;;  %v1473_v59 = vld [vmem:[#allocation14 + $0x60] sm:$0xff] }
 0x1bc   : > { %2014 = vmatpush3.msra.mxu1 %v1076_v61  ;;  %2058 = vmatpush3.msra.mxu0 %v1200_v60  ;;  %v1215_v61 = vld [vmem:[#allocation11 + $0x88] sm:$0xff]  ;;  %v1488_v60 = vld [vmem:[#allocation14 + $0xd8] sm:$0xff] }
 0x1bd   : > { %2015 = vmatprep.subr.mxu1 %v1091_v62  ;;  %2059 = vmatprep.subr.mxu0 %v1215_v61  ;;  %v1199_v62 = vld [vmem:[#allocation11 + $0x8] sm:$0xff]  ;;  %v1472_v61 = vld [vmem:[#allocation14 + $0x58] sm:$0xff] }
 0x1be   : > { %2016 = vmatpush3.msra.mxu1 %v1075_v63  ;;  %2060 = vmatpush3.msra.mxu0 %v1199_v62  ;;  %v1214_v63 = vld [vmem:[#allocation11 + $0x80] sm:$0xff]  ;;  %v1487_v62 = vld [vmem:[#allocation14 + $0xd0] sm:$0xff] }
 0x1bf   : > { %2017 = vmatprep.subr.mxu1 %v1090_v0  ;;  %v1198_v0 = vld [vmem:[#allocation11] sm:$0xff]  ;;  %2061 = vmatprep.subr.mxu0 %v1214_v63  ;;  %v1471_v63 = vld [vmem:[#allocation14 + $0x50] sm:$0xff] }
 0x1c0   : > { %2018 = vmatpush3.msra.mxu1 %v1074_v1  ;;  %2062 = vmatpush3.msra.mxu0 %v1198_v0  ;;  %v1365_v1 = vld [vmem:[#allocation13 + $0xf8] sm:$0xff]  ;;  %v1486_v0 = vld [vmem:[#allocation14 + $0xc8] sm:$0xff] }
 0x1c1   : > { %2019 = vmatprep.subr.mxu1 %v1089_v2  ;;  %v1349_v2 = vld [vmem:[#allocation13 + $0x78] sm:$0xff]  ;;  %2107 = vmatprep.subr.mxu0 %v1492_v52  ;;  %v1462_v52 = vld [vmem:[#allocation14 + $0x8] sm:$0xff] }
 0x1c2   : > { %2020 = vmatpush3.msra.mxu1 %v1073_v3  ;;  %v1364_v3 = vld [vmem:[#allocation13 + $0xf0] sm:$0xff] }
 0x1c3   : > { %2021 = vmatprep.subr.mxu1 %v1088_v4  ;;  %v1348_v4 = vld [vmem:[#allocation13 + $0x70] sm:$0xff] }
 0x1c4   : > { %2022 = vmatpush3.msra.mxu1 %v1072_v5  ;;  %v1363_v5 = vld [vmem:[#allocation13 + $0xe8] sm:$0xff] }
 0x1c5   : > { %2023 = vmatprep.subr.mxu1 %v1087_v6  ;;  %v1347_v6 = vld [vmem:[#allocation13 + $0x68] sm:$0xff] }
 0x1c6   : > { %2024 = vmatpush3.msra.mxu1 %v1071_v7  ;;  %v1362_v7 = vld [vmem:[#allocation13 + $0xe0] sm:$0xff] }
 0x1c7   : > { %2069 = vmatprep.subr.mxu1 %v1365_v1  ;;  %v1470_v1 = vld [vmem:[#allocation14 + $0x48] sm:$0xff] }
 0x267   : > { %v1969_v25 = vpop.f32.mrf.mxu1 }
 0x269   : > { %v1970_v27 = vpop.f32.mrf.mxu1 }
 0x26a   : > { %v1971_v30 = vadd.f32 %v1970_v27, %v1969_v25 }
 0x26b   : > { %v1972_v31 = vpop.f32.mrf.mxu1 }
 0x26c   : > { %v943_v32 = vadd.f32 %v1971_v30, %v1872_v26  ;;  %v1358_v30 = vld [vmem:[#allocation13 + $0xc0] sm:$0xff] }
 0x26d   : > { %v1973_v34 = vpop.f32.mrf.mxu1 }
 0x26e   : > { %v951_v35 = vmax.f32 %v943_v32, 0.0  ;;  %v1974_v36 = vadd.f32 %v1973_v34, %v1972_v31  ;;  %v1342_v31 = vld [vmem:[#allocation13 + $0x40] sm:$0xff]  ;;  %v1357_v32 = vld [vmem:[#allocation13 + $0xb8] sm:$0xff]  ;;  %v1356_v34 = vld [vmem:[#allocation13 + $0xb0] sm:$0xff] }
 0x270   : > { %v948_v37 = vadd.f32 %v1974_v36, %v1872_v26  ;;  %v1051_v38 = vadd.f32 %v1043_v33, %v951_v35  ;;  %v1341_v33 = vld [vmem:[#allocation13 + $0x38] sm:$0xff]  ;;  %v1340_v35 = vld [vmem:[#allocation13 + $0x30] sm:$0xff]  ;;  %v1355_v36 = vld [vmem:[#allocation13 + $0xa8] sm:$0xff] }
 0x272   : > { %v952_v40 = vmax.f32 %v948_v37, 0.0  ;;  %v3062_v41 = vmax.f32 %v1051_v38, 0.0  ;;  %v1339_v37 = vld [vmem:[#allocation13 + $0x28] sm:$0xff]  ;;  %v1354_v38 = vld [vmem:[#allocation13 + $0xa0] sm:$0xff] }
 0x274   : > { %v1052_v42 = vadd.f32 %v1048_v39, %v952_v40  ;;  %1174 = vmatprep.mubr.f32.mxu1 %v3062_v41  ;;  %v1060_v45 = vrot.slane %v3062_v41, 6  ;;  %v1338_v39 = vld [vmem:[#allocation13 + $0x20] sm:$0xff]  ;;  %v1353_v40 = vld [vmem:[#allocation13 + $0x98] sm:$0xff] }
 0x276   : > { %v3065_v43 = vmax.f32 %v1052_v42, 0.0  ;;  %v1337_v42 = vld [vmem:[#allocation13 + $0x18] sm:$0xff] }
 0x278   : > { %v1056_v44 = vrot.slane %v3065_v43, 6 }
 0x27a   : > { %v1064_v46 = vsel %vm1059_vm2, %v1056_v44, %v1060_v45  ;;  %v1061_v47 = vsel %vm1059_vm2, %v1060_v45, %v1056_v44  ;;  %v1352_v44 = vld [vmem:[#allocation13 + $0x90] sm:$0xff] }
 0x27b   : > { %1878 = vmatmul.mubr.msk.f32.vlgmr.msra.gmra.mxu1 %vm1897_vm3, %v1064_v46  ;;  %v1336_v45 = vld [vmem:[#allocation13 + $0x10] sm:$0xff]  ;;  %v1351_v46 = vld [vmem:[#allocation13 + $0x88] sm:$0xff] }
 0x27c   : > { %1179 = vmatprep.mubr.f32.mxu1 %v3065_v43  ;;  %2070 = vmatpush3.msra.mxu1 %v1349_v2  ;;  %v1485_v2 = vld [vmem:[#allocation14 + $0xc0] sm:$0xff] }
 0x27d   : > { %2071 = vmatprep.subr.mxu1 %v1364_v3  ;;  %v1469_v3 = vld [vmem:[#allocation14 + $0x40] sm:$0xff] }
 0x27e   : > { %2072 = vmatpush3.msra.mxu1 %v1348_v4 }
 0x27f   : > { %1180 = vmatmul.mubr.f32.gmra.mxu1 %v1061_v47  ;;  %2073 = vmatprep.subr.mxu1 %v1363_v5  ;;  %v1335_v47 = vld [vmem:[#allocation13 + $0x8] sm:$0xff]  ;;  %v1879_v5 = vld [vmem:[%s3166_s10] ss:$0 sm:$0xff] }
 0x280   : > { %2074 = vmatpush3.msra.mxu1 %v1347_v6 }
 0x281   : > { %2075 = vmatprep.subr.mxu1 %v1362_v7 }
 0x282   : > { %2076 = vmatpush3.msra.mxu1 %v1346_v8 }
 0x283   : > { %2077 = vmatprep.subr.mxu1 %v1361_v9 }
 0x284   : > { %2078 = vmatpush3.msra.mxu1 %v1345_v10 }
 0x285   : > { %2079 = vmatprep.subr.mxu1 %v1360_v11 }
 0x286   : > { %2080 = vmatpush3.msra.mxu1 %v1344_v12 }
 0x287   : > { %2081 = vmatprep.subr.mxu1 %v1359_v13 }
 0x288   : > { %2082 = vmatpush3.msra.mxu1 %v1343_v29  ;;  %v1583_v29 = vld [vmem:[#allocation16 + $0x30] sm:$0xff] }
 0x289   : > { %2083 = vmatprep.subr.mxu1 %v1358_v30  ;;  %v1582_v30 = vld [vmem:[#allocation16 + $0x28] sm:$0xff] }
 0x28a   : > { %2084 = vmatpush3.msra.mxu1 %v1342_v31  ;;  %v1581_v31 = vld [vmem:[#allocation16 + $0x20] sm:$0xff] }
 0x28b   : > { %2085 = vmatprep.subr.mxu1 %v1357_v32  ;;  %v1580_v32 = vld [vmem:[#allocation16 + $0x18] sm:$0xff] }
 0x28c   : > { %2086 = vmatpush3.msra.mxu1 %v1341_v33  ;;  %v1579_v33 = vld [vmem:[#allocation16 + $0x10] sm:$0xff] }
 0x28d   : > { %2087 = vmatprep.subr.mxu1 %v1356_v34  ;;  %v1578_v34 = vld [vmem:[#allocation16 + $0x8] sm:$0xff] }
 0x28e   : > { %2088 = vmatpush3.msra.mxu1 %v1340_v35  ;;  %v1577_v35 = vld [vmem:[#allocation16] sm:$0xff] }
 0x28f   : > { %2089 = vmatprep.subr.mxu1 %v1355_v36  ;;  %v1484_v36 = vld [vmem:[#allocation14 + $0xb8] sm:$0xff] }
 0x290   : > { %2090 = vmatpush3.msra.mxu1 %v1339_v37  ;;  %v1468_v37 = vld [vmem:[#allocation14 + $0x38] sm:$0xff] }
 0x291   : > { %2091 = vmatprep.subr.mxu1 %v1354_v38  ;;  %v1483_v38 = vld [vmem:[#allocation14 + $0xb0] sm:$0xff] }
 0x292   : > { %2092 = vmatpush3.msra.mxu1 %v1338_v39  ;;  %v1467_v39 = vld [vmem:[#allocation14 + $0x30] sm:$0xff] }
 0x293   : > { %2093 = vmatprep.subr.mxu1 %v1353_v40  ;;  %v1482_v40 = vld [vmem:[#allocation14 + $0xa8] sm:$0xff] }
 0x294   : > { %2094 = vmatpush3.msra.mxu1 %v1337_v42  ;;  %v1466_v42 = vld [vmem:[#allocation14 + $0x28] sm:$0xff] }
 0x295   : > { %2095 = vmatprep.subr.mxu1 %v1352_v44  ;;  %v1481_v44 = vld [vmem:[#allocation14 + $0xa0] sm:$0xff] }
 0x296   : > { %2096 = vmatpush3.msra.mxu1 %v1336_v45  ;;  %v1465_v45 = vld [vmem:[#allocation14 + $0x20] sm:$0xff] }
 0x297   : > { %2097 = vmatprep.subr.mxu1 %v1351_v46  ;;  %v1480_v46 = vld [vmem:[#allocation14 + $0x98] sm:$0xff] }
 0x298   : > { %2098 = vmatpush3.msra.mxu1 %v1335_v47  ;;  %v1464_v47 = vld [vmem:[#allocation14 + $0x18] sm:$0xff] }
 0x299   : > { %2099 = vmatprep.subr.mxu1 %v1350_v48  ;;  %v1479_v48 = vld [vmem:[#allocation14 + $0x90] sm:$0xff] }
 0x29a   : > { %2100 = vmatpush3.msra.mxu1 %v1334_v50  ;;  %v1463_v50 = vld [vmem:[#allocation14 + $0x10] sm:$0xff] }
 0x29b   : > { %2198 = vmatprep.subr.mxu1 %v1592_v51 }
 0x33b   : > { %v2025_v14 = vpop.f32.mrf.mxu1 }
 0x33d   : > { %v2026_v16 = vpop.f32.mrf.mxu1 }
 0x33e   : > { %v2027_v17 = vadd.f32 %v2026_v16, %v2025_v14 }
 0x33f   : > { %v2028_v18 = vpop.f32.mrf.mxu1 }
 0x340   : > { %v1177_v19 = vadd.f32 %v2027_v17, %v1876_v15 }
 0x341   : > { %v2029_v20 = vpop.f32.mrf.mxu1 }
 0x342   : > { %v1185_v21 = vmax.f32 %v1177_v19, 0.0  ;;  %v2030_v22 = vadd.f32 %v2029_v20, %v2028_v18 }
 0x344   : > { %v1182_v23 = vadd.f32 %v2030_v22, %v1876_v15  ;;  %1301 = vmatprep.mubr.f32.mxu0 %v1185_v21  ;;  %v1191_v25 = vrot.slane %v1185_v21, 6  ;;  %v1591_v22 = vld [vmem:[#allocation16 + $0x70] sm:$0xff] }
 0x346   : > { %v1186_v24 = vmax.f32 %v1182_v23, 0.0  ;;  %v1589_v23 = vld [vmem:[#allocation16 + $0x60] sm:$0xff] }
 0x348   : > { %v1188_v26 = vrot.slane %v1186_v24, 6 }
 0x34a   : > { %v1195_v27 = vsel %vm1059_vm2, %v1188_v26, %v1191_v25  ;;  %v1192_v28 = vsel %vm1059_vm2, %v1191_v25, %v1188_v26  ;;  %v1587_v25 = vld [vmem:[#allocation16 + $0x50] sm:$0xff]  ;;  %v1586_v26 = vld [vmem:[#allocation16 + $0x48] sm:$0xff] }
 0x34b   : > { %1881 = vmatmul.mubr.msk.f32.vlgmr.msra.gmra.mxu0 %vm1897_vm3, %v1195_v27  ;;  %v1585_v27 = vld [vmem:[#allocation16 + $0x40] sm:$0xff] }
 0x34c   : > { %1306 = vmatprep.mubr.f32.mxu0 %v1186_v24  ;;  %2108 = vmatpush3.msra.mxu0 %v1476_v53  ;;  %v1588_v24 = vld [vmem:[#allocation16 + $0x58] sm:$0xff]  ;;  %v1477_v53 = vld [vmem:[#allocation14 + $0x80] sm:$0xff] }
 0x34d   : > { %2109 = vmatprep.subr.mxu0 %v1491_v54  ;;  %v1461_v54 = vld [vmem:[#allocation14] sm:$0xff] }
 0x34e   : > { %2110 = vmatpush3.msra.mxu0 %v1475_v55 }
 0x34f   : > { %1307 = vmatmul.mubr.f32.gmra.mxu0 %v1192_v28  ;;  %2111 = vmatprep.subr.mxu0 %v1490_v56  ;;  %v1584_v28 = vld [vmem:[#allocation16 + $0x38] sm:$0xff]  ;;  %v1882_v56 = vld [vmem:[%s3168_s12] ss:$0 sm:$0xff] }
 0x350   : > { %2112 = vmatpush3.msra.mxu0 %v1474_v57 }
 0x351   : > { %2113 = vmatprep.subr.mxu0 %v1489_v58 }
 0x352   : > { %2114 = vmatpush3.msra.mxu0 %v1473_v59 }
 0x353   : > { %2115 = vmatprep.subr.mxu0 %v1488_v60 }
 0x354   : > { %2116 = vmatpush3.msra.mxu0 %v1472_v61 }
 0x355   : > { %2117 = vmatprep.subr.mxu0 %v1487_v62 }
 0x356   : > { %2118 = vmatpush3.msra.mxu0 %v1471_v63 }
 0x357   : > { %2119 = vmatprep.subr.mxu0 %v1486_v0 }
 0x358   : > { %2120 = vmatpush3.msra.mxu0 %v1470_v1 }
 0x359   : > { %2121 = vmatprep.subr.mxu0 %v1485_v2 }
 0x35a   : > { %2122 = vmatpush3.msra.mxu0 %v1469_v3 }
 0x35b   : > { %2123 = vmatprep.subr.mxu0 %v1484_v36 }
 0x35c   : > { %2124 = vmatpush3.msra.mxu0 %v1468_v37 }
 0x35d   : > { %2125 = vmatprep.subr.mxu0 %v1483_v38 }
 0x35e   : > { %2126 = vmatpush3.msra.mxu0 %v1467_v39 }
 0x35f   : > { %2127 = vmatprep.subr.mxu0 %v1482_v40 }
 0x360   : > { %2128 = vmatpush3.msra.mxu0 %v1466_v42 }
 0x361   : > { %2129 = vmatprep.subr.mxu0 %v1481_v44 }
 0x362   : > { %2130 = vmatpush3.msra.mxu0 %v1465_v45 }
 0x363   : > { %2131 = vmatprep.subr.mxu0 %v1480_v46 }
 0x364   : > { %2132 = vmatpush3.msra.mxu0 %v1464_v47 }
 0x365   : > { %2133 = vmatprep.subr.mxu0 %v1479_v48 }
 0x366   : > { %2134 = vmatpush3.msra.mxu0 %v1463_v50 }
 0x40b   : > { %v2063_v4 = vpop.f32.mrf.mxu0 }
 0x40d   : > { %v2064_v6 = vpop.f32.mrf.mxu0 }
 0x40e   : > { %v2065_v7 = vadd.f32 %v2064_v6, %v2063_v4 }
 0x40f   : > { %v2066_v8 = vpop.f32.mrf.mxu0 }
 0x410   : > { %v1304_v9 = vadd.f32 %v2065_v7, %v1879_v5 }
 0x411   : > { %v2067_v10 = vpop.f32.mrf.mxu0 }
 0x412   : > { %v1312_v11 = vmax.f32 %v1304_v9, 0.0  ;;  %v2068_v12 = vadd.f32 %v2067_v10, %v2066_v8  ;;  %v1885_v8 = vld [vmem:[%s3223_s7] ss:$0 sm:$0xff]  ;;  %s2606_s7 = scalar_lea.vmem %s2605_s3, 512 }
 0x413   : > { %p2608_p3 = scmp.lt.s32.totalorder %s2606_s7, %s2600_s9 }
 0x414   : > { %v1309_v13 = vadd.f32 %v2068_v12, %v1879_v5  ;;  %v1314_v14 = vadd.f32 %v1312_v11, %v3062_v41  ;;  %v1590_v41 = vld [vmem:[#allocation16 + $0x68] sm:$0xff] }
 0x415   : > { %p2609_p4 = por %p2608_p3, %p2607_p1 }
 0x416   : > { %v1313_v15 = vmax.f32 %v1309_v13, 0.0  ;;  %v1316_v16 = vmax.f32 %v1314_v14, 0.0 }
 0x417   : > { %p2610_p6 = pnand %p2609_p4, %p2603_p12 }
 0x418   : > { %v1315_v17 = vadd.f32 %v1313_v15, %v3065_v43  ;;  %1437 = vmatprep.mubr.f32.mxu1 %v1316_v16  ;;  %v1323_v20 = vrot.slane %v1316_v16, 4 }
 0x41a   : > { %v1317_v18 = vmax.f32 %v1315_v17, 0.0 }
 0x41c   : > { %v1319_v19 = vrot.slane %v1317_v18, 4 }
 0x41e   : > { %v1327_v21 = vsel %vm1322_vm4, %v1319_v19, %v1323_v20  ;;  %v1324_v43 = vsel %vm1322_vm4, %v1323_v20, %v1319_v19 }
 0x41f   : > { %1884 = vmatmul.mubr.msk.f32.vlgmr.msra.gmra.mxu1 %vm1898_vm5, %v1327_v21 }
 0x420   : > { %2199 = vmatpush3.msra.mxu1 %v1592_v51  ;;  %1442 = vmatprep.mubr.f32.mxu1 %v1317_v18  ;;  %v1478_v51 = vld [vmem:[#allocation14 + $0x88] sm:$0xff] }
 0x421   : > { %2200 = vmatprep.subr.mxu1 %v1591_v22  ;;  %2135 = vmatprep.subr.mxu0 %v1478_v51 }
 0x422   : > { %2201 = vmatpush3.msra.mxu1 %v1591_v22  ;;  %2136 = vmatpush3.msra.mxu0 %v1462_v52 }
 0x423   : > { %2202 = vmatprep.subr.mxu1 %v1590_v41  ;;  %1443 = vmatmul.mubr.f32.gmra.mxu1 %v1324_v43 }
 0x424   : > { %2203 = vmatpush3.msra.mxu1 %v1590_v41  ;;  %2230 = vmatprep.mubr.f32.mxu1 %v1316_v16 }
 0x425   : > { %2204 = vmatprep.subr.mxu1 %v1589_v23  ;;  %2137 = vmatprep.subr.mxu0 %v1477_v53 }
 0x426   : > { %2205 = vmatpush3.msra.mxu1 %v1589_v23  ;;  %2138 = vmatpush3.msra.mxu0 %v1461_v54 }
 0x427   : > { %2206 = vmatprep.subr.mxu1 %v1588_v24 }
 0x428   : > { %2207 = vmatpush3.msra.mxu1 %v1588_v24 }
 0x429   : > { %2208 = vmatprep.subr.mxu1 %v1587_v25 }
 0x42a   : > { %2209 = vmatpush3.msra.mxu1 %v1587_v25 }
 0x42b   : > { %2210 = vmatprep.subr.mxu1 %v1586_v26 }
 0x42c   : > { %2211 = vmatpush3.msra.mxu1 %v1586_v26 }
 0x42d   : > { %2212 = vmatprep.subr.mxu1 %v1585_v27 }
 0x42e   : > { %2213 = vmatpush3.msra.mxu1 %v1585_v27 }
 0x42f   : > { %2214 = vmatprep.subr.mxu1 %v1584_v28 }
 0x430   : > { %2215 = vmatpush3.msra.mxu1 %v1584_v28 }
 0x431   : > { %2216 = vmatprep.subr.mxu1 %v1583_v29 }
 0x432   : > { %2217 = vmatpush3.msra.mxu1 %v1583_v29 }
 0x433   : > { %2218 = vmatprep.subr.mxu1 %v1582_v30 }
 0x434   : > { %2219 = vmatpush3.msra.mxu1 %v1582_v30 }
 0x435   : > { %2220 = vmatprep.subr.mxu1 %v1581_v31 }
 0x436   : > { %2221 = vmatpush3.msra.mxu1 %v1581_v31 }
 0x437   : > { %2222 = vmatprep.subr.mxu1 %v1580_v32 }
 0x438   : > { %2223 = vmatpush3.msra.mxu1 %v1580_v32 }
 0x439   : > { %2224 = vmatprep.subr.mxu1 %v1579_v33 }
 0x43a   : > { %2225 = vmatpush3.msra.mxu1 %v1579_v33 }
 0x43b   : > { %2226 = vmatprep.subr.mxu1 %v1578_v34 }
 0x43c   : > { %2227 = vmatpush3.msra.mxu1 %v1578_v34 }
 0x43d   : > { %2228 = vmatprep.subr.mxu1 %v1577_v35 }
 0x43e   : > { %2229 = vmatpush3.msra.mxu1 %v1577_v35 }
 0x43f   : > { %2231 = vmatmul.mubr.f32.vlgmr.msra.gmra.mxu1 %v1317_v18 }
 0x4df   : > { %v2101_v55 = vpop.f32.mrf.mxu1 }
 0x4e1   : > { %v2102_v57 = vpop.f32.mrf.mxu1 }
 0x4e2   : > { %v2103_v58 = vadd.f32 %v2102_v57, %v2101_v55 }
 0x4e3   : > { %v2104_v59 = vpop.f32.mrf.mxu1 }
 0x4e4   : > { %v1440_v60 = vadd.f32 %v2103_v58, %v1882_v56 }
 0x4e5   : > { %v2105_v61 = vpop.f32.mrf.mxu1 }
 0x4e6   : > { %v1448_v62 = vmax.f32 %v1440_v60, 0.0  ;;  %v2106_v63 = vadd.f32 %v2105_v61, %v2104_v59 }
 0x4e8   : > { %v1445_v0 = vadd.f32 %v2106_v63, %v1882_v56  ;;  %1564 = vmatprep.mubr.f32.mxu0 %v1448_v62  ;;  %v1454_v2 = vrot.slane %v1448_v62, 4 }
 0x4ea   : > { %v1449_v1 = vmax.f32 %v1445_v0, 0.0 }
 0x4ec   : > { %v1451_v3 = vrot.slane %v1449_v1, 4 }
 0x4ee   : > { %v1458_v4 = vsel %vm1322_vm4, %v1451_v3, %v1454_v2  ;;  %v1455_v5 = vsel %vm1322_vm4, %v1454_v2, %v1451_v3 }
 0x4ef   : > { %1887 = vmatmul.mubr.msk.f32.vlgmr.msra.gmra.mxu0 %vm1898_vm5, %v1458_v4 }
 0x4f0   : > { %1569 = vmatprep.mubr.f32.mxu0 %v1449_v1 }
 0x4f3   : > { %1570 = vmatmul.mubr.f32.gmra.mxu0 %v1455_v5 }
 0x4ff   : > { %v2232_v6 = vpop.f32.mrf.mxu1 }
 0x500   : > { %v1672_v20 = vadd.f32 %v2232_v6, %v1888_v49 }
 0x501   : > { %v1666_v11 = vpop.f32.mrf.mxu1 }
 0x502   : > { %v1667_v15 = vadd.f32 %v1888_v49, %v1666_v11 }
 0x5af   : > { %v2139_v7 = vpop.f32.mrf.mxu0 }
 0x5b1   : > { %v2140_v9 = vpop.f32.mrf.mxu0 }
 0x5b2   : > { %v2141_v10 = vadd.f32 %v2140_v9, %v2139_v7 }
 0x5b3   : > { %v2142_v12 = vpop.f32.mrf.mxu0 }
 0x5b4   : > { %v1567_v13 = vadd.f32 %v2141_v10, %v1885_v8 }
 0x5b5   : > { %v2143_v14 = vpop.f32.mrf.mxu0 }
 0x5b6   : > { %v1575_v16 = vmax.f32 %v1567_v13, 0.0  ;;  %v2144_v17 = vadd.f32 %v2143_v14, %v2142_v12 }
 0x5b8   : > { %v1675_v18 = vadd.f32 %v1667_v15, %v1575_v16  ;;  %v1572_v19 = vadd.f32 %v2144_v17, %v1885_v8 }
 0x5ba   : > { %v1677_v21 = vmax.f32 %v1675_v18, 0.0  ;;  %v1576_v22 = vmax.f32 %v1572_v19, 0.0 }
 0x5bc   : > { %1679 = vst [vmem:[%s682_s1] sm:$0xff] %v1677_v21  ;;  %v1676_v41 = vadd.f32 %v1672_v20, %v1576_v22 }
 0x5be   : > { %v1678_v43 = vmax.f32 %v1676_v41, 0.0 }
 0x5c0   : > { %1680 = vst [vmem:[%s682_s1 + $0x8] sm:$0xff] %v1678_v43 }
 0x5c1   : > { %2613 = shalt.err (!%p2610_p6)
}
 0x5c2   : > { %s2614_s11 = scalar_lea.hbm %s3113_s19, 256  ;;  %s2618_s1 = scalar_lea.hbm %s3225_s29, 512 }
 0x5c3   : > { %p2615_p8 = scmp.ne.s32.totalorder %s3113_s19, %s2614_s11  ;;  %p2619_p11 = scmp.lt.s32.totalorder %s3113_s19, %s3225_s29 }
 0x5c4   : > { %p2620_p13 = scmp.lt.s32.totalorder %s2618_s1, %s2614_s11 }
 0x5c5   : > { %p2616_p10 = pnand %p2615_p8, %p3226_p5 }
 0x5c6   : > { %p2621_p0 = por %p2620_p13, %p2619_p11 }
 0x5c7   : > { %p2617_p7 = pneg %p2616_p10 }
 0x5c9   : > { %p2622_p2 = pnand %p2621_p0, %p2617_p7 }
 0x5cb   : > { %2625 = shalt.err (!%p2622_p2)
}
 0x5cc   : > { %s2694_s13 = smov 128   ;;  %s2695_s9 = smov 8  }
 0x5cd   : > { %2267 = dma.vmem_to_hbm [thread:$0]  (%p3226_p5), %s3108_s23, 256, %s3113_s19, %s1682_s15, %s2694_s13, %s2694_s13, %s2695_s9  }
 0x5ce PF: > { %s1710_s0 = sand.u32 1, %s2668_s24   ;;  %p3227_p9 = scmp.ne.s32.totalorder %s3208_s17, 0 }
 0x5cf   : > { %p3228_p12 = scmp.ge.s32.totalorder %s2680_s27, 2  ;;  %s1711_s3 = scalar_lea.sflag [#allocation4], %s1710_s0 }
 0x5d1   : > { %p2299_p1 = pnand %p3228_p12, %p3227_p9 }
 0x5d3   : > { %p2300_p3 = pneg %p2299_p1 }
 0x5d5   : > { %2663 = dma.done.wait (%p2300_p3), %s1711_s3, 256  }
 0x5d6   : > { %2665 = vsyncadd (%p2300_p3), %s1711_s3, 4294967040  ;;  %p34_p4 = scmp.ge.s32.totalorder %s2927_s22, 4   ;;  %s3229_s24 = smov %s2672_s25 }
 0x5d7   : > { %s3230_s25 = smov %s2676_s26  ;;  %s3231_s26 = smov %s2938_s5 }
 0x5d8   : > { %s3232_s27 = smov %s2927_s22  ;;  %36 = sbr.rel (!%p34_p4) target bundleno = 22 (0x16), region = 165 }
 0x5dd   :  { %1716 = vsyncpa [#allocation3], 1 }
 0x5de   :  { %1718 = vsyncpa [#allocation3 + $0x1], 1 }
 0x5df   :  { %1719 = vsyncpa [#allocation6], 1 }
 0x5e0   :  { %1720 = vsyncpa [#allocation9], 1 }
 0x5e1   :  { %1721 = vsyncpa [#allocation12], 1 }
 0x5e2   :  { %1722 = vsyncpa [#allocation15], 1 }
 0x5e3   :  { %1723 = vsyncpa [#allocation4], 1 }
 0x5e4   :  { %1725 = vsyncpa [#allocation4 + $0x1], 1 }

</bundles_post_ra>
